<compile_context>
chip_gen: v5e
topology: v5e:2x2
jax: 0.10.0
libtpu: 0.0.40
codegen_flags: <defaults>
</compile_context>

<pallas_src>
import math
import functools

import numpy as np
import jax
import jax.numpy as jnp
from jax.experimental import pallas as pl
from jax.experimental.pallas import tpu as pltpu


# ----------------------------- helpers -----------------------------

def _ln(x, g, b, eps):
    mu = jnp.mean(x, axis=-1, keepdims=True)
    xc = x - mu
    var = jnp.mean(xc * xc, axis=-1, keepdims=True)
    return xc * jax.lax.rsqrt(var + eps) * g + b


# ----------------------- fully fused forward kernel -----------------------

def _fused_forward_kernel(src_ref, mask_ref, embed_ref, pe_ref,
                          inw_ref, inb_ref, outw_ref, outb_ref,
                          ln1g_ref, ln1b_ref,
                          ff1w_ref, ff1b_ref, ff2w_ref, ff2b_ref,
                          ln2g_ref, ln2b_ref,
                          d1w_ref, d1b_ref, d2w_ref, d2b_ref,
                          o_ref,
                          qkv_ref, attn_ref,
                          *, B, S, E, H, Dh, L, Vemb, eps):
    f32 = jnp.float32
    M = B * S

    # --- embedding lookup as one-hot matmul (no dynamic gather) -------------
    ids = src_ref[...]                                          # (M, 1) int32
    iota = jax.lax.broadcasted_iota(jnp.int32, (M, Vemb), 1)
    onehot = (iota == ids).astype(f32)                          # (M, Vemb)
    x = jnp.dot(onehot, embed_ref[...], preferred_element_type=f32)
    x = x * math.sqrt(E)

    # --- positional encoding (batch-major: same (S, E) table per batch) -----
    pe = pe_ref[...]
    pe_t = pe if B == 1 else jnp.concatenate([pe] * B, axis=0)  # (M, E)
    x = x + pe_t

    mask = mask_ref[...]                                        # (M, M) 0 / -1e30
    scale = 1.0 / math.sqrt(Dh)

    # --- encoder layers (post-norm, relu FFN), all in VMEM ------------------
    for l in range(L):
        # QKV projection: one matmul for all heads of all batches
        qkv_ref[...] = (jnp.dot(x, inw_ref[l], preferred_element_type=f32)
                        + inb_ref[l])

        for h in range(H):
            q = qkv_ref[:, h * Dh:(h + 1) * Dh]                  # (M, Dh)
            k = qkv_ref[:, E + h * Dh:E + (h + 1) * Dh]          # (M, Dh)
            v = qkv_ref[:, 2 * E + h * Dh:2 * E + (h + 1) * Dh]  # (M, Dh)
            # scores for both batches in one matmul; cross-batch entries are
            # masked to -1e30 so the softmax is exactly per-batch.
            s = jax.lax.dot_general(q, k, (((1,), (1,)), ((), ())),
                                    preferred_element_type=f32) * scale + mask
            m = jnp.max(s, axis=-1, keepdims=True)
            p = jnp.exp(s - m)
            p = p / jnp.sum(p, axis=-1, keepdims=True)           # exact softmax
            attn_ref[:, h * Dh:(h + 1) * Dh] = jnp.dot(
                p, v, preferred_element_type=f32)

        # output projection + residual + LN1 (post-norm)
        attn = (jnp.dot(attn_ref[...], outw_ref[l],
                        preferred_element_type=f32) + outb_ref[l])
        h1 = _ln(x + attn, ln1g_ref[l], ln1b_ref[l], eps)

        # feed-forward + residual + LN2
        f = jnp.dot(h1, ff1w_ref[l], preferred_element_type=f32) + ff1b_ref[l]
        f = jnp.maximum(f, 0.0)
        f = jnp.dot(f, ff2w_ref[l], preferred_element_type=f32) + ff2b_ref[l]
        x = _ln(h1 + f, ln2g_ref[l], ln2b_ref[l], eps)

    # --- decoder MLP + log-softmax (lane-dense padded vocab) ----------------
    d = jnp.dot(x, d1w_ref[...], preferred_element_type=f32) + d1b_ref[...]
    d = jnp.maximum(d, 0.0)
    logits = (jnp.dot(d, d2w_ref[...], preferred_element_type=f32)
              + d2b_ref[...])                                    # (M, Vp)
    m = jnp.max(logits, axis=-1, keepdims=True)
    sh = logits - m
    lse = jnp.log(jnp.sum(jnp.exp(sh), axis=-1, keepdims=True))
    o_ref[...] = sh - lse


# ----------------------------- parameters -----------------------------

def init_params(key, vocab, E, ff, nlayers, max_len=64):
    """All derived layouts (stacked layers, padded vocab, bias reshapes) are
    built ONCE here so nothing is padded / stacked inside the traced forward."""
    keys = iter(jax.random.split(key, 8 + 10 * nlayers))

    def w(shape, scale=0.1):
        return jax.random.normal(next(keys), shape, jnp.float32) * scale

    L = nlayers

    # embedding table padded to a sublane-aligned row count (extra rows = 0,
    # never selected by the one-hot).
    Vemb = ((vocab + 7) // 8) * 8
    embed = w((vocab, E))
    embed_p = jnp.zeros((Vemb, E), jnp.float32).at[:vocab].set(embed)

    # sinusoidal positional-encoding buffer, shape (max_len, E)
    pos = jnp.arange(max_len, dtype=jnp.float32)[:, None]
    div = jnp.exp(jnp.arange(0, E, 2, dtype=jnp.float32)
                  * (-math.log(10000.0) / E))
    pe = jnp.zeros((max_len, E), jnp.float32)
    pe = pe.at[:, 0::2].set(jnp.sin(pos * div))
    pe = pe.at[:, 1::2].set(jnp.cos(pos * div))

    # per-layer weights, stacked along a leading layer axis
    acc = {k: [] for k in ("in_w", "in_b", "out_w", "out_b",
                           "ln1_g", "ln1_b", "ff1_w", "ff1_b",
                           "ff2_w", "ff2_b", "ln2_g", "ln2_b")}
    for _ in range(L):
        acc["in_w"].append(w((E, 3 * E)))
        acc["in_b"].append(jnp.zeros((1, 3 * E), jnp.float32))
        acc["out_w"].append(w((E, E)))
        acc["out_b"].append(jnp.zeros((1, E), jnp.float32))
        acc["ff1_w"].append(w((E, ff)))
        acc["ff1_b"].append(jnp.zeros((1, ff), jnp.float32))
        acc["ff2_w"].append(w((ff, E)))
        acc["ff2_b"].append(jnp.zeros((1, E), jnp.float32))
        acc["ln1_g"].append(jnp.ones((1, E), jnp.float32))
        acc["ln1_b"].append(jnp.zeros((1, E), jnp.float32))
        acc["ln2_g"].append(jnp.ones((1, E), jnp.float32))
        acc["ln2_b"].append(jnp.zeros((1, E), jnp.float32))
    params = {k: jnp.stack(v, axis=0) for k, v in acc.items()}

    # decoder, with vocab padded to a lane-dense multiple of 128
    # (pad bias = -1e30 so padded logits vanish in the softmax sum).
    Vp = ((vocab + 127) // 128) * 128
    dec2_w = w((E, vocab))
    dec2_b = jnp.zeros((vocab,), jnp.float32)
    params.update({
        "embed": embed_p,
        "pe": pe,
        "dec1_w": w((E, E)),
        "dec1_b": jnp.zeros((1, E), jnp.float32),
        "dec2_w": jnp.pad(dec2_w, ((0, 0), (0, Vp - vocab))),
        "dec2_b": jnp.concatenate(
            [dec2_b, jnp.full((Vp - vocab,), -1e30, jnp.float32)]).reshape(1, Vp),
    })
    return params


# ----------------------------- forward pass -----------------------------

def model_forward(params, src, *, nheads, vocab):
    B, S = src.shape
    M = B * S
    Vemb, E = params["embed"].shape
    Vp = params["dec2_w"].shape[1]
    L = params["in_w"].shape[0]
    F = params["ff1_w"].shape[2]
    H = nheads
    Dh = E // H
    assert E % H == 0

    src2 = src.reshape(M, 1).astype(jnp.int32)

    # block-diagonal attention mask (0 within a batch, -1e30 across batches);
    # built with numpy, so it folds to a constant at trace time.
    bid = np.arange(M) // S
    mask = jnp.asarray(
        np.where(bid[:, None] == bid[None, :], 0.0, -1e30).astype(np.float32))

    def full_spec(a):
        nd = a.ndim
        return pl.BlockSpec(a.shape, lambda i, nd=nd: (0,) * nd)

    pe_spec = pl.BlockSpec((S, E), lambda i: (0, 0))   # first S rows of the PE buffer

    args = [src2, mask, params["embed"], params["pe"],
            params["in_w"], params["in_b"], params["out_w"], params["out_b"],
            params["ln1_g"], params["ln1_b"],
            params["ff1_w"], params["ff1_b"], params["ff2_w"], params["ff2_b"],
            params["ln2_g"], params["ln2_b"],
            params["dec1_w"], params["dec1_b"],
            params["dec2_w"], params["dec2_b"]]
    in_specs = ([full_spec(src2), full_spec(mask), full_spec(params["embed"]),
                 pe_spec] + [full_spec(a) for a in args[4:]])

    # advisory cost estimate
    flops = 2 * M * Vemb * E
    flops += L * (2 * M * E * 3 * E + 4 * H * M * M * Dh
                  + 2 * M * E * E + 4 * M * E * F)
    flops += 2 * M * E * E + 2 * M * E * Vp
    trans = L * (H * M * M + 4 * M) + M * Vp + M
    bytes_accessed = 4 * (sum(int(np.prod(a.shape)) for a in args) + M * Vp)

    out = pl.pallas_call(
        functools.partial(_fused_forward_kernel, B=B, S=S, E=E, H=H, Dh=Dh,
                          L=L, Vemb=Vemb, eps=1e-5),
        grid=(1,),
        out_shape=jax.ShapeDtypeStruct((M, Vp), jnp.float32),
        in_specs=in_specs,
        out_specs=pl.BlockSpec((M, Vp), lambda i: (0, 0)),
        scratch_shapes=[pltpu.VMEM((M, 3 * E), jnp.float32),
                        pltpu.VMEM((M, E), jnp.float32)],
        compiler_params=pltpu.CompilerParams(
            dimension_semantics=("arbitrary",)),
        cost_estimate=pl.CostEstimate(flops=flops,
                                      transcendentals=trans,
                                      bytes_accessed=bytes_accessed),
    )(*args)

    return out[:, :vocab].reshape(B, S, vocab)


# ----------------------------- main -----------------------------

if __name__ == "__main__":
    VOCAB, EMBED, NHEADS, NLAYERS, HIDDEN = 50, 32, 4, 2, 64
    B, S = 2, 8

    key = jax.random.PRNGKey(0)
    pkey, dkey = jax.random.split(key)
    params = init_params(pkey, VOCAB, EMBED, HIDDEN, NLAYERS)
    src = jax.random.randint(dkey, (B, S), 0, VOCAB, dtype=jnp.int32)

    fwd = jax.jit(functools.partial(model_forward, nheads=NHEADS, vocab=VOCAB))
    out = jax.block_until_ready(fwd(params, src))

    assert out.shape == (B, S, VOCAB), out.shape
    assert bool(jnp.all(jnp.isfinite(out)))
    # log-softmax rows should (approximately) sum to 1 in prob space
    assert bool(jnp.allclose(jnp.sum(jnp.exp(out), axis=-1), 1.0, atol=1e-4))
    print("KERNEL_OK")
</pallas_src>

<mosaic_0001>
module attributes {stable_mosaic.version = 11 : i64} {
  func.func @_fused_forward_kernel(%arg0: i32, %arg1: memref<16x1xi32, #tpu.memory_space<vmem>>, %arg2: memref<16x16xf32, #tpu.memory_space<vmem>>, %arg3: memref<56x32xf32, #tpu.memory_space<vmem>>, %arg4: memref<8x32xf32, #tpu.memory_space<vmem>>, %arg5: memref<2x32x96xf32, #tpu.memory_space<vmem>>, %arg6: memref<2x1x96xf32, #tpu.memory_space<vmem>>, %arg7: memref<2x32x32xf32, #tpu.memory_space<vmem>>, %arg8: memref<2x1x32xf32, #tpu.memory_space<vmem>>, %arg9: memref<2x1x32xf32, #tpu.memory_space<vmem>>, %arg10: memref<2x1x32xf32, #tpu.memory_space<vmem>>, %arg11: memref<2x32x64xf32, #tpu.memory_space<vmem>>, %arg12: memref<2x1x64xf32, #tpu.memory_space<vmem>>, %arg13: memref<2x64x32xf32, #tpu.memory_space<vmem>>, %arg14: memref<2x1x32xf32, #tpu.memory_space<vmem>>, %arg15: memref<2x1x32xf32, #tpu.memory_space<vmem>>, %arg16: memref<2x1x32xf32, #tpu.memory_space<vmem>>, %arg17: memref<32x32xf32, #tpu.memory_space<vmem>>, %arg18: memref<1x32xf32, #tpu.memory_space<vmem>>, %arg19: memref<32x128xf32, #tpu.memory_space<vmem>>, %arg20: memref<1x128xf32, #tpu.memory_space<vmem>>, %arg21: memref<16x128xf32, #tpu.memory_space<vmem>>, %arg22: memref<16x96xf32, #tpu.memory_space<vmem>>, %arg23: memref<16x32xf32, #tpu.memory_space<vmem>>) attributes {dimension_semantics = [#tpu.dimension_semantics<arbitrary>], iteration_bounds = array<i64: 1>, scalar_prefetch = 0 : i64, scratch_operands = 2 : i64, tpu.core_type = #tpu.core_type<tc>, window_params = [{pipeline_mode = #tpu.pipeline_mode<synchronous>, transform_indices = @transform_0, window_bounds = array<i64: 16, 1>}, {pipeline_mode = #tpu.pipeline_mode<synchronous>, transform_indices = @transform_1, window_bounds = array<i64: 16, 16>}, {pipeline_mode = #tpu.pipeline_mode<synchronous>, transform_indices = @transform_2, window_bounds = array<i64: 56, 32>}, {transform_indices = @transform_3, window_bounds = array<i64: 8, 32>}, {pipeline_mode = #tpu.pipeline_mode<synchronous>, transform_indices = @transform_4, window_bounds = array<i64: 2, 32, 96>}, {pipeline_mode = #tpu.pipeline_mode<synchronous>, transform_indices = @transform_5, window_bounds = array<i64: 2, 1, 96>}, {pipeline_mode = #tpu.pipeline_mode<synchronous>, transform_indices = @transform_6, window_bounds = array<i64: 2, 32, 32>}, {pipeline_mode = #tpu.pipeline_mode<synchronous>, transform_indices = @transform_7, window_bounds = array<i64: 2, 1, 32>}, {pipeline_mode = #tpu.pipeline_mode<synchronous>, transform_indices = @transform_8, window_bounds = array<i64: 2, 1, 32>}, {pipeline_mode = #tpu.pipeline_mode<synchronous>, transform_indices = @transform_9, window_bounds = array<i64: 2, 1, 32>}, {pipeline_mode = #tpu.pipeline_mode<synchronous>, transform_indices = @transform_10, window_bounds = array<i64: 2, 32, 64>}, {pipeline_mode = #tpu.pipeline_mode<synchronous>, transform_indices = @transform_11, window_bounds = array<i64: 2, 1, 64>}, {pipeline_mode = #tpu.pipeline_mode<synchronous>, transform_indices = @transform_12, window_bounds = array<i64: 2, 64, 32>}, {pipeline_mode = #tpu.pipeline_mode<synchronous>, transform_indices = @transform_13, window_bounds = array<i64: 2, 1, 32>}, {pipeline_mode = #tpu.pipeline_mode<synchronous>, transform_indices = @transform_14, window_bounds = array<i64: 2, 1, 32>}, {pipeline_mode = #tpu.pipeline_mode<synchronous>, transform_indices = @transform_15, window_bounds = array<i64: 2, 1, 32>}, {pipeline_mode = #tpu.pipeline_mode<synchronous>, transform_indices = @transform_16, window_bounds = array<i64: 32, 32>}, {pipeline_mode = #tpu.pipeline_mode<synchronous>, transform_indices = @transform_17, window_bounds = array<i64: 1, 32>}, {pipeline_mode = #tpu.pipeline_mode<synchronous>, transform_indices = @transform_18, window_bounds = array<i64: 32, 128>}, {pipeline_mode = #tpu.pipeline_mode<synchronous>, transform_indices = @transform_19, window_bounds = array<i64: 1, 128>}, {pipeline_mode = #tpu.pipeline_mode<synchronous>, transform_indices = @transform_20, window_bounds = array<i64: 16, 128>}]} {
    %c0 = arith.constant 0 : index
    %c0_0 = arith.constant 0 : index
    %0 = vector.load %arg1[%c0, %c0_0] : memref<16x1xi32, #tpu.memory_space<vmem>>, vector<16x1xi32>
    %1 = tpu.iota {dimensions = array<i32: 1>} : vector<16x56xi32>
    %2 = vector.broadcast %0 : vector<16x1xi32> to vector<16x56xi32>
    %3 = arith.cmpi eq, %1, %2 : vector<16x56xi32>
    %4 = arith.extui %3 : vector<16x56xi1> to vector<16x56xi32>
    %5 = arith.sitofp %4 : vector<16x56xi32> to vector<16x56xf32>
    %c0_1 = arith.constant 0 : index
    %c0_2 = arith.constant 0 : index
    %6 = vector.load %arg3[%c0_1, %c0_2] : memref<56x32xf32, #tpu.memory_space<vmem>>, vector<56x32xf32>
    %cst = arith.constant dense<0.000000e+00> : vector<16x32xf32>
    %7 = tpu.matmul %5, %6, %cst {dimension_numbers = #tpu.dot_dimension_numbers<[1], [0], [0], [1], [0, 0, 1, 1], [], []>} : vector<16x56xf32>, vector<56x32xf32>, vector<16x32xf32> -> vector<16x32xf32>
    %cst_3 = arith.constant 5.65685415 : f32
    %8 = vector.broadcast %cst_3 : f32 to vector<16x32xf32>
    %9 = arith.mulf %7, %8 : vector<16x32xf32>
    %c0_4 = arith.constant 0 : index
    %c0_5 = arith.constant 0 : index
    %10 = vector.load %arg4[%c0_4, %c0_5] : memref<8x32xf32, #tpu.memory_space<vmem>>, vector<8x32xf32>
    %11 = tpu.concatenate %10, %10 in 0 : vector<8x32xf32>, vector<8x32xf32> -> vector<16x32xf32>
    %12 = arith.addf %9, %11 : vector<16x32xf32>
    %c0_6 = arith.constant 0 : index
    %c0_7 = arith.constant 0 : index
    %13 = vector.load %arg2[%c0_6, %c0_7] : memref<16x16xf32, #tpu.memory_space<vmem>>, vector<16x16xf32>
    %c0_8 = arith.constant 0 : index
    %c0_9 = arith.constant 0 : index
    %c0_10 = arith.constant 0 : index
    %14 = vector.load %arg5[%c0_8, %c0_9, %c0_10] : memref<2x32x96xf32, #tpu.memory_space<vmem>>, vector<1x32x96xf32>
    %15 = vector.shape_cast %14 : vector<1x32x96xf32> to vector<32x96xf32>
    %cst_11 = arith.constant dense<0.000000e+00> : vector<16x96xf32>
    %16 = tpu.matmul %12, %15, %cst_11 {dimension_numbers = #tpu.dot_dimension_numbers<[1], [0], [0], [1], [0, 0, 1, 1], [], []>} : vector<16x32xf32>, vector<32x96xf32>, vector<16x96xf32> -> vector<16x96xf32>
    %c0_12 = arith.constant 0 : index
    %c0_13 = arith.constant 0 : index
    %c0_14 = arith.constant 0 : index
    %17 = vector.load %arg6[%c0_12, %c0_13, %c0_14] : memref<2x1x96xf32, #tpu.memory_space<vmem>>, vector<1x1x96xf32>
    %18 = vector.shape_cast %17 : vector<1x1x96xf32> to vector<1x96xf32>
    %19 = vector.broadcast %18 : vector<1x96xf32> to vector<16x96xf32>
    %20 = arith.addf %16, %19 : vector<16x96xf32>
    %c0_15 = arith.constant 0 : index
    %c0_16 = arith.constant 0 : index
    %21 = vector.load %arg22[%c0_15, %c0_16] : memref<16x96xf32, #tpu.memory_space<vmem>>, vector<16x96xf32>
    tpu.vector_store %arg22[%c0_15, %c0_16], %20 {strides = array<i32>} : memref<16x96xf32, #tpu.memory_space<vmem>>, vector<16x96xf32>,
    %c0_17 = arith.constant 0 : index
    %c0_18 = arith.constant 0 : index
    %22 = vector.load %arg22[%c0_17, %c0_18] : memref<16x96xf32, #tpu.memory_space<vmem>>, vector<16x8xf32>
    %c0_19 = arith.constant 0 : index
    %c32 = arith.constant 32 : index
    %23 = vector.load %arg22[%c0_19, %c32] : memref<16x96xf32, #tpu.memory_space<vmem>>, vector<16x8xf32>
    %c0_20 = arith.constant 0 : index
    %c64 = arith.constant 64 : index
    %24 = vector.load %arg22[%c0_20, %c64] : memref<16x96xf32, #tpu.memory_space<vmem>>, vector<16x8xf32>
    %cst_21 = arith.constant dense<0.000000e+00> : vector<16x16xf32>
    %25 = tpu.matmul %22, %23, %cst_21 {dimension_numbers = #tpu.dot_dimension_numbers<[1], [1], [0], [0], [0, 0, 1, 0], [], []>} : vector<16x8xf32>, vector<16x8xf32>, vector<16x16xf32> -> vector<16x16xf32>
    %cst_22 = arith.constant 0.353553385 : f32
    %26 = vector.broadcast %cst_22 : f32 to vector<16x16xf32>
    %27 = arith.mulf %25, %26 : vector<16x16xf32>
    %28 = arith.addf %27, %13 : vector<16x16xf32>
    %cst_23 = arith.constant dense<0xFF800000> : vector<16xf32>
    %29 = vector.multi_reduction <maximumf>, %28, %cst_23 [1] : vector<16x16xf32> to vector<16xf32>
    %30 = vector.shape_cast %29 : vector<16xf32> to vector<16x1xf32>
    %31 = vector.broadcast %30 : vector<16x1xf32> to vector<16x16xf32>
    %32 = arith.subf %28, %31 : vector<16x16xf32>
    %33 = math.exp %32 : vector<16x16xf32>
    %cst_24 = arith.constant dense<0.000000e+00> : vector<16xf32>
    %34 = vector.multi_reduction <add>, %33, %cst_24 [1] : vector<16x16xf32> to vector<16xf32>
    %35 = vector.shape_cast %34 : vector<16xf32> to vector<16x1xf32>
    %36 = vector.broadcast %35 : vector<16x1xf32> to vector<16x16xf32>
    %37 = arith.divf %33, %36 : vector<16x16xf32>
    %cst_25 = arith.constant dense<0.000000e+00> : vector<16x8xf32>
    %38 = tpu.matmul %37, %24, %cst_25 {dimension_numbers = #tpu.dot_dimension_numbers<[1], [0], [0], [1], [0, 0, 1, 1], [], []>} : vector<16x16xf32>, vector<16x8xf32>, vector<16x8xf32> -> vector<16x8xf32>
    %c0_26 = arith.constant 0 : index
    %c0_27 = arith.constant 0 : index
    %39 = vector.load %arg23[%c0_26, %c0_27] : memref<16x32xf32, #tpu.memory_space<vmem>>, vector<16x8xf32>
    tpu.vector_store %arg23[%c0_26, %c0_27], %38 {strides = array<i32>} : memref<16x32xf32, #tpu.memory_space<vmem>>, vector<16x8xf32>,
    %c0_28 = arith.constant 0 : index
    %c8 = arith.constant 8 : index
    %40 = vector.load %arg22[%c0_28, %c8] : memref<16x96xf32, #tpu.memory_space<vmem>>, vector<16x8xf32>
    %c0_29 = arith.constant 0 : index
    %c40 = arith.constant 40 : index
    %41 = vector.load %arg22[%c0_29, %c40] : memref<16x96xf32, #tpu.memory_space<vmem>>, vector<16x8xf32>
    %c0_30 = arith.constant 0 : index
    %c72 = arith.constant 72 : index
    %42 = vector.load %arg22[%c0_30, %c72] : memref<16x96xf32, #tpu.memory_space<vmem>>, vector<16x8xf32>
    %cst_31 = arith.constant dense<0.000000e+00> : vector<16x16xf32>
    %43 = tpu.matmul %40, %41, %cst_31 {dimension_numbers = #tpu.dot_dimension_numbers<[1], [1], [0], [0], [0, 0, 1, 0], [], []>} : vector<16x8xf32>, vector<16x8xf32>, vector<16x16xf32> -> vector<16x16xf32>
    %cst_32 = arith.constant 0.353553385 : f32
    %44 = vector.broadcast %cst_32 : f32 to vector<16x16xf32>
    %45 = arith.mulf %43, %44 : vector<16x16xf32>
    %46 = arith.addf %45, %13 : vector<16x16xf32>
    %cst_33 = arith.constant dense<0xFF800000> : vector<16xf32>
    %47 = vector.multi_reduction <maximumf>, %46, %cst_33 [1] : vector<16x16xf32> to vector<16xf32>
    %48 = vector.shape_cast %47 : vector<16xf32> to vector<16x1xf32>
    %49 = vector.broadcast %48 : vector<16x1xf32> to vector<16x16xf32>
    %50 = arith.subf %46, %49 : vector<16x16xf32>
    %51 = math.exp %50 : vector<16x16xf32>
    %cst_34 = arith.constant dense<0.000000e+00> : vector<16xf32>
    %52 = vector.multi_reduction <add>, %51, %cst_34 [1] : vector<16x16xf32> to vector<16xf32>
    %53 = vector.shape_cast %52 : vector<16xf32> to vector<16x1xf32>
    %54 = vector.broadcast %53 : vector<16x1xf32> to vector<16x16xf32>
    %55 = arith.divf %51, %54 : vector<16x16xf32>
    %cst_35 = arith.constant dense<0.000000e+00> : vector<16x8xf32>
    %56 = tpu.matmul %55, %42, %cst_35 {dimension_numbers = #tpu.dot_dimension_numbers<[1], [0], [0], [1], [0, 0, 1, 1], [], []>} : vector<16x16xf32>, vector<16x8xf32>, vector<16x8xf32> -> vector<16x8xf32>
    %c0_36 = arith.constant 0 : index
    %c8_37 = arith.constant 8 : index
    %57 = vector.load %arg23[%c0_36, %c8_37] : memref<16x32xf32, #tpu.memory_space<vmem>>, vector<16x8xf32>
    tpu.vector_store %arg23[%c0_36, %c8_37], %56 {strides = array<i32>} : memref<16x32xf32, #tpu.memory_space<vmem>>, vector<16x8xf32>,
    %c0_38 = arith.constant 0 : index
    %c16 = arith.constant 16 : index
    %58 = vector.load %arg22[%c0_38, %c16] : memref<16x96xf32, #tpu.memory_space<vmem>>, vector<16x8xf32>
    %c0_39 = arith.constant 0 : index
    %c48 = arith.constant 48 : index
    %59 = vector.load %arg22[%c0_39, %c48] : memref<16x96xf32, #tpu.memory_space<vmem>>, vector<16x8xf32>
    %c0_40 = arith.constant 0 : index
    %c80 = arith.constant 80 : index
    %60 = vector.load %arg22[%c0_40, %c80] : memref<16x96xf32, #tpu.memory_space<vmem>>, vector<16x8xf32>
    %cst_41 = arith.constant dense<0.000000e+00> : vector<16x16xf32>
    %61 = tpu.matmul %58, %59, %cst_41 {dimension_numbers = #tpu.dot_dimension_numbers<[1], [1], [0], [0], [0, 0, 1, 0], [], []>} : vector<16x8xf32>, vector<16x8xf32>, vector<16x16xf32> -> vector<16x16xf32>
    %cst_42 = arith.constant 0.353553385 : f32
    %62 = vector.broadcast %cst_42 : f32 to vector<16x16xf32>
    %63 = arith.mulf %61, %62 : vector<16x16xf32>
    %64 = arith.addf %63, %13 : vector<16x16xf32>
    %cst_43 = arith.constant dense<0xFF800000> : vector<16xf32>
    %65 = vector.multi_reduction <maximumf>, %64, %cst_43 [1] : vector<16x16xf32> to vector<16xf32>
    %66 = vector.shape_cast %65 : vector<16xf32> to vector<16x1xf32>
    %67 = vector.broadcast %66 : vector<16x1xf32> to vector<16x16xf32>
    %68 = arith.subf %64, %67 : vector<16x16xf32>
    %69 = math.exp %68 : vector<16x16xf32>
    %cst_44 = arith.constant dense<0.000000e+00> : vector<16xf32>
    %70 = vector.multi_reduction <add>, %69, %cst_44 [1] : vector<16x16xf32> to vector<16xf32>
    %71 = vector.shape_cast %70 : vector<16xf32> to vector<16x1xf32>
    %72 = vector.broadcast %71 : vector<16x1xf32> to vector<16x16xf32>
    %73 = arith.divf %69, %72 : vector<16x16xf32>
    %cst_45 = arith.constant dense<0.000000e+00> : vector<16x8xf32>
    %74 = tpu.matmul %73, %60, %cst_45 {dimension_numbers = #tpu.dot_dimension_numbers<[1], [0], [0], [1], [0, 0, 1, 1], [], []>} : vector<16x16xf32>, vector<16x8xf32>, vector<16x8xf32> -> vector<16x8xf32>
    %c0_46 = arith.constant 0 : index
    %c16_47 = arith.constant 16 : index
    %75 = vector.load %arg23[%c0_46, %c16_47] : memref<16x32xf32, #tpu.memory_space<vmem>>, vector<16x8xf32>
    tpu.vector_store %arg23[%c0_46, %c16_47], %74 {strides = array<i32>} : memref<16x32xf32, #tpu.memory_space<vmem>>, vector<16x8xf32>,
    %c0_48 = arith.constant 0 : index
    %c24 = arith.constant 24 : index
    %76 = vector.load %arg22[%c0_48, %c24] : memref<16x96xf32, #tpu.memory_space<vmem>>, vector<16x8xf32>
    %c0_49 = arith.constant 0 : index
    %c56 = arith.constant 56 : index
    %77 = vector.load %arg22[%c0_49, %c56] : memref<16x96xf32, #tpu.memory_space<vmem>>, vector<16x8xf32>
    %c0_50 = arith.constant 0 : index
    %c88 = arith.constant 88 : index
    %78 = vector.load %arg22[%c0_50, %c88] : memref<16x96xf32, #tpu.memory_space<vmem>>, vector<16x8xf32>
    %cst_51 = arith.constant dense<0.000000e+00> : vector<16x16xf32>
    %79 = tpu.matmul %76, %77, %cst_51 {dimension_numbers = #tpu.dot_dimension_numbers<[1], [1], [0], [0], [0, 0, 1, 0], [], []>} : vector<16x8xf32>, vector<16x8xf32>, vector<16x16xf32> -> vector<16x16xf32>
    %cst_52 = arith.constant 0.353553385 : f32
    %80 = vector.broadcast %cst_52 : f32 to vector<16x16xf32>
    %81 = arith.mulf %79, %80 : vector<16x16xf32>
    %82 = arith.addf %81, %13 : vector<16x16xf32>
    %cst_53 = arith.constant dense<0xFF800000> : vector<16xf32>
    %83 = vector.multi_reduction <maximumf>, %82, %cst_53 [1] : vector<16x16xf32> to vector<16xf32>
    %84 = vector.shape_cast %83 : vector<16xf32> to vector<16x1xf32>
    %85 = vector.broadcast %84 : vector<16x1xf32> to vector<16x16xf32>
    %86 = arith.subf %82, %85 : vector<16x16xf32>
    %87 = math.exp %86 : vector<16x16xf32>
    %cst_54 = arith.constant dense<0.000000e+00> : vector<16xf32>
    %88 = vector.multi_reduction <add>, %87, %cst_54 [1] : vector<16x16xf32> to vector<16xf32>
    %89 = vector.shape_cast %88 : vector<16xf32> to vector<16x1xf32>
    %90 = vector.broadcast %89 : vector<16x1xf32> to vector<16x16xf32>
    %91 = arith.divf %87, %90 : vector<16x16xf32>
    %cst_55 = arith.constant dense<0.000000e+00> : vector<16x8xf32>
    %92 = tpu.matmul %91, %78, %cst_55 {dimension_numbers = #tpu.dot_dimension_numbers<[1], [0], [0], [1], [0, 0, 1, 1], [], []>} : vector<16x16xf32>, vector<16x8xf32>, vector<16x8xf32> -> vector<16x8xf32>
    %c0_56 = arith.constant 0 : index
    %c24_57 = arith.constant 24 : index
    %93 = vector.load %arg23[%c0_56, %c24_57] : memref<16x32xf32, #tpu.memory_space<vmem>>, vector<16x8xf32>
    tpu.vector_store %arg23[%c0_56, %c24_57], %92 {strides = array<i32>} : memref<16x32xf32, #tpu.memory_space<vmem>>, vector<16x8xf32>,
    %c0_58 = arith.constant 0 : index
    %c0_59 = arith.constant 0 : index
    %94 = vector.load %arg23[%c0_58, %c0_59] : memref<16x32xf32, #tpu.memory_space<vmem>>, vector<16x32xf32>
    %c0_60 = arith.constant 0 : index
    %c0_61 = arith.constant 0 : index
    %c0_62 = arith.constant 0 : index
    %95 = vector.load %arg7[%c0_60, %c0_61, %c0_62] : memref<2x32x32xf32, #tpu.memory_space<vmem>>, vector<1x32x32xf32>
    %96 = vector.shape_cast %95 : vector<1x32x32xf32> to vector<32x32xf32>
    %cst_63 = arith.constant dense<0.000000e+00> : vector<16x32xf32>
    %97 = tpu.matmul %94, %96, %cst_63 {dimension_numbers = #tpu.dot_dimension_numbers<[1], [0], [0], [1], [0, 0, 1, 1], [], []>} : vector<16x32xf32>, vector<32x32xf32>, vector<16x32xf32> -> vector<16x32xf32>
    %c0_64 = arith.constant 0 : index
    %c0_65 = arith.constant 0 : index
    %c0_66 = arith.constant 0 : index
    %98 = vector.load %arg8[%c0_64, %c0_65, %c0_66] : memref<2x1x32xf32, #tpu.memory_space<vmem>>, vector<1x1x32xf32>
    %99 = vector.shape_cast %98 : vector<1x1x32xf32> to vector<1x32xf32>
    %100 = vector.broadcast %99 : vector<1x32xf32> to vector<16x32xf32>
    %101 = arith.addf %97, %100 : vector<16x32xf32>
    %102 = arith.addf %12, %101 : vector<16x32xf32>
    %c0_67 = arith.constant 0 : index
    %c0_68 = arith.constant 0 : index
    %c0_69 = arith.constant 0 : index
    %103 = vector.load %arg9[%c0_67, %c0_68, %c0_69] : memref<2x1x32xf32, #tpu.memory_space<vmem>>, vector<1x1x32xf32>
    %104 = vector.shape_cast %103 : vector<1x1x32xf32> to vector<1x32xf32>
    %c0_70 = arith.constant 0 : index
    %c0_71 = arith.constant 0 : index
    %c0_72 = arith.constant 0 : index
    %105 = vector.load %arg10[%c0_70, %c0_71, %c0_72] : memref<2x1x32xf32, #tpu.memory_space<vmem>>, vector<1x1x32xf32>
    %106 = vector.shape_cast %105 : vector<1x1x32xf32> to vector<1x32xf32>
    %cst_73 = arith.constant dense<0.000000e+00> : vector<16xf32>
    %107 = vector.multi_reduction <add>, %102, %cst_73 [1] : vector<16x32xf32> to vector<16xf32>
    %108 = vector.shape_cast %107 : vector<16xf32> to vector<16x1xf32>
    %cst_74 = arith.constant 3.200000e+01 : f32
    %109 = vector.broadcast %cst_74 : f32 to vector<16x1xf32>
    %110 = arith.divf %108, %109 : vector<16x1xf32>
    %111 = vector.broadcast %110 : vector<16x1xf32> to vector<16x32xf32>
    %112 = arith.subf %102, %111 : vector<16x32xf32>
    %113 = arith.mulf %112, %112 : vector<16x32xf32>
    %cst_75 = arith.constant dense<0.000000e+00> : vector<16xf32>
    %114 = vector.multi_reduction <add>, %113, %cst_75 [1] : vector<16x32xf32> to vector<16xf32>
    %115 = vector.shape_cast %114 : vector<16xf32> to vector<16x1xf32>
    %cst_76 = arith.constant 3.200000e+01 : f32
    %116 = vector.broadcast %cst_76 : f32 to vector<16x1xf32>
    %117 = arith.divf %115, %116 : vector<16x1xf32>
    %cst_77 = arith.constant 9.99999974E-6 : f32
    %118 = vector.broadcast %cst_77 : f32 to vector<16x1xf32>
    %119 = arith.addf %117, %118 : vector<16x1xf32>
    %120 = math.rsqrt %119 : vector<16x1xf32>
    %121 = vector.broadcast %120 : vector<16x1xf32> to vector<16x32xf32>
    %122 = arith.mulf %112, %121 : vector<16x32xf32>
    %123 = vector.broadcast %104 : vector<1x32xf32> to vector<16x32xf32>
    %124 = arith.mulf %122, %123 : vector<16x32xf32>
    %125 = vector.broadcast %106 : vector<1x32xf32> to vector<16x32xf32>
    %126 = arith.addf %124, %125 : vector<16x32xf32>
    %c0_78 = arith.constant 0 : index
    %c0_79 = arith.constant 0 : index
    %c0_80 = arith.constant 0 : index
    %127 = vector.load %arg11[%c0_78, %c0_79, %c0_80] : memref<2x32x64xf32, #tpu.memory_space<vmem>>, vector<1x32x64xf32>
    %128 = vector.shape_cast %127 : vector<1x32x64xf32> to vector<32x64xf32>
    %cst_81 = arith.constant dense<0.000000e+00> : vector<16x64xf32>
    %129 = tpu.matmul %126, %128, %cst_81 {dimension_numbers = #tpu.dot_dimension_numbers<[1], [0], [0], [1], [0, 0, 1, 1], [], []>} : vector<16x32xf32>, vector<32x64xf32>, vector<16x64xf32> -> vector<16x64xf32>
    %c0_82 = arith.constant 0 : index
    %c0_83 = arith.constant 0 : index
    %c0_84 = arith.constant 0 : index
    %130 = vector.load %arg12[%c0_82, %c0_83, %c0_84] : memref<2x1x64xf32, #tpu.memory_space<vmem>>, vector<1x1x64xf32>
    %131 = vector.shape_cast %130 : vector<1x1x64xf32> to vector<1x64xf32>
    %132 = vector.broadcast %131 : vector<1x64xf32> to vector<16x64xf32>
    %133 = arith.addf %129, %132 : vector<16x64xf32>
    %cst_85 = arith.constant 0.000000e+00 : f32
    %134 = vector.broadcast %cst_85 : f32 to vector<16x64xf32>
    %135 = arith.maximumf %133, %134 : vector<16x64xf32>
    %c0_86 = arith.constant 0 : index
    %c0_87 = arith.constant 0 : index
    %c0_88 = arith.constant 0 : index
    %136 = vector.load %arg13[%c0_86, %c0_87, %c0_88] : memref<2x64x32xf32, #tpu.memory_space<vmem>>, vector<1x64x32xf32>
    %137 = vector.shape_cast %136 : vector<1x64x32xf32> to vector<64x32xf32>
    %cst_89 = arith.constant dense<0.000000e+00> : vector<16x32xf32>
    %138 = tpu.matmul %135, %137, %cst_89 {dimension_numbers = #tpu.dot_dimension_numbers<[1], [0], [0], [1], [0, 0, 1, 1], [], []>} : vector<16x64xf32>, vector<64x32xf32>, vector<16x32xf32> -> vector<16x32xf32>
    %c0_90 = arith.constant 0 : index
    %c0_91 = arith.constant 0 : index
    %c0_92 = arith.constant 0 : index
    %139 = vector.load %arg14[%c0_90, %c0_91, %c0_92] : memref<2x1x32xf32, #tpu.memory_space<vmem>>, vector<1x1x32xf32>
    %140 = vector.shape_cast %139 : vector<1x1x32xf32> to vector<1x32xf32>
    %141 = vector.broadcast %140 : vector<1x32xf32> to vector<16x32xf32>
    %142 = arith.addf %138, %141 : vector<16x32xf32>
    %143 = arith.addf %126, %142 : vector<16x32xf32>
    %c0_93 = arith.constant 0 : index
    %c0_94 = arith.constant 0 : index
    %c0_95 = arith.constant 0 : index
    %144 = vector.load %arg15[%c0_93, %c0_94, %c0_95] : memref<2x1x32xf32, #tpu.memory_space<vmem>>, vector<1x1x32xf32>
    %145 = vector.shape_cast %144 : vector<1x1x32xf32> to vector<1x32xf32>
    %c0_96 = arith.constant 0 : index
    %c0_97 = arith.constant 0 : index
    %c0_98 = arith.constant 0 : index
    %146 = vector.load %arg16[%c0_96, %c0_97, %c0_98] : memref<2x1x32xf32, #tpu.memory_space<vmem>>, vector<1x1x32xf32>
    %147 = vector.shape_cast %146 : vector<1x1x32xf32> to vector<1x32xf32>
    %cst_99 = arith.constant dense<0.000000e+00> : vector<16xf32>
    %148 = vector.multi_reduction <add>, %143, %cst_99 [1] : vector<16x32xf32> to vector<16xf32>
    %149 = vector.shape_cast %148 : vector<16xf32> to vector<16x1xf32>
    %cst_100 = arith.constant 3.200000e+01 : f32
    %150 = vector.broadcast %cst_100 : f32 to vector<16x1xf32>
    %151 = arith.divf %149, %150 : vector<16x1xf32>
    %152 = vector.broadcast %151 : vector<16x1xf32> to vector<16x32xf32>
    %153 = arith.subf %143, %152 : vector<16x32xf32>
    %154 = arith.mulf %153, %153 : vector<16x32xf32>
    %cst_101 = arith.constant dense<0.000000e+00> : vector<16xf32>
    %155 = vector.multi_reduction <add>, %154, %cst_101 [1] : vector<16x32xf32> to vector<16xf32>
    %156 = vector.shape_cast %155 : vector<16xf32> to vector<16x1xf32>
    %cst_102 = arith.constant 3.200000e+01 : f32
    %157 = vector.broadcast %cst_102 : f32 to vector<16x1xf32>
    %158 = arith.divf %156, %157 : vector<16x1xf32>
    %cst_103 = arith.constant 9.99999974E-6 : f32
    %159 = vector.broadcast %cst_103 : f32 to vector<16x1xf32>
    %160 = arith.addf %158, %159 : vector<16x1xf32>
    %161 = math.rsqrt %160 : vector<16x1xf32>
    %162 = vector.broadcast %161 : vector<16x1xf32> to vector<16x32xf32>
    %163 = arith.mulf %153, %162 : vector<16x32xf32>
    %164 = vector.broadcast %145 : vector<1x32xf32> to vector<16x32xf32>
    %165 = arith.mulf %163, %164 : vector<16x32xf32>
    %166 = vector.broadcast %147 : vector<1x32xf32> to vector<16x32xf32>
    %167 = arith.addf %165, %166 : vector<16x32xf32>
    %c1 = arith.constant 1 : index
    %c0_104 = arith.constant 0 : index
    %c0_105 = arith.constant 0 : index
    %168 = vector.load %arg5[%c1, %c0_104, %c0_105] : memref<2x32x96xf32, #tpu.memory_space<vmem>>, vector<1x32x96xf32>
    %169 = vector.shape_cast %168 : vector<1x32x96xf32> to vector<32x96xf32>
    %cst_106 = arith.constant dense<0.000000e+00> : vector<16x96xf32>
    %170 = tpu.matmul %167, %169, %cst_106 {dimension_numbers = #tpu.dot_dimension_numbers<[1], [0], [0], [1], [0, 0, 1, 1], [], []>} : vector<16x32xf32>, vector<32x96xf32>, vector<16x96xf32> -> vector<16x96xf32>
    %c1_107 = arith.constant 1 : index
    %c0_108 = arith.constant 0 : index
    %c0_109 = arith.constant 0 : index
    %171 = vector.load %arg6[%c1_107, %c0_108, %c0_109] : memref<2x1x96xf32, #tpu.memory_space<vmem>>, vector<1x1x96xf32>
    %172 = vector.shape_cast %171 : vector<1x1x96xf32> to vector<1x96xf32>
    %173 = vector.broadcast %172 : vector<1x96xf32> to vector<16x96xf32>
    %174 = arith.addf %170, %173 : vector<16x96xf32>
    %c0_110 = arith.constant 0 : index
    %c0_111 = arith.constant 0 : index
    %175 = vector.load %arg22[%c0_110, %c0_111] : memref<16x96xf32, #tpu.memory_space<vmem>>, vector<16x96xf32>
    tpu.vector_store %arg22[%c0_110, %c0_111], %174 {strides = array<i32>} : memref<16x96xf32, #tpu.memory_space<vmem>>, vector<16x96xf32>,
    %c0_112 = arith.constant 0 : index
    %c0_113 = arith.constant 0 : index
    %176 = vector.load %arg22[%c0_112, %c0_113] : memref<16x96xf32, #tpu.memory_space<vmem>>, vector<16x8xf32>
    %c0_114 = arith.constant 0 : index
    %c32_115 = arith.constant 32 : index
    %177 = vector.load %arg22[%c0_114, %c32_115] : memref<16x96xf32, #tpu.memory_space<vmem>>, vector<16x8xf32>
    %c0_116 = arith.constant 0 : index
    %c64_117 = arith.constant 64 : index
    %178 = vector.load %arg22[%c0_116, %c64_117] : memref<16x96xf32, #tpu.memory_space<vmem>>, vector<16x8xf32>
    %cst_118 = arith.constant dense<0.000000e+00> : vector<16x16xf32>
    %179 = tpu.matmul %176, %177, %cst_118 {dimension_numbers = #tpu.dot_dimension_numbers<[1], [1], [0], [0], [0, 0, 1, 0], [], []>} : vector<16x8xf32>, vector<16x8xf32>, vector<16x16xf32> -> vector<16x16xf32>
    %cst_119 = arith.constant 0.353553385 : f32
    %180 = vector.broadcast %cst_119 : f32 to vector<16x16xf32>
    %181 = arith.mulf %179, %180 : vector<16x16xf32>
    %182 = arith.addf %181, %13 : vector<16x16xf32>
    %cst_120 = arith.constant dense<0xFF800000> : vector<16xf32>
    %183 = vector.multi_reduction <maximumf>, %182, %cst_120 [1] : vector<16x16xf32> to vector<16xf32>
    %184 = vector.shape_cast %183 : vector<16xf32> to vector<16x1xf32>
    %185 = vector.broadcast %184 : vector<16x1xf32> to vector<16x16xf32>
    %186 = arith.subf %182, %185 : vector<16x16xf32>
    %187 = math.exp %186 : vector<16x16xf32>
    %cst_121 = arith.constant dense<0.000000e+00> : vector<16xf32>
    %188 = vector.multi_reduction <add>, %187, %cst_121 [1] : vector<16x16xf32> to vector<16xf32>
    %189 = vector.shape_cast %188 : vector<16xf32> to vector<16x1xf32>
    %190 = vector.broadcast %189 : vector<16x1xf32> to vector<16x16xf32>
    %191 = arith.divf %187, %190 : vector<16x16xf32>
    %cst_122 = arith.constant dense<0.000000e+00> : vector<16x8xf32>
    %192 = tpu.matmul %191, %178, %cst_122 {dimension_numbers = #tpu.dot_dimension_numbers<[1], [0], [0], [1], [0, 0, 1, 1], [], []>} : vector<16x16xf32>, vector<16x8xf32>, vector<16x8xf32> -> vector<16x8xf32>
    %c0_123 = arith.constant 0 : index
    %c0_124 = arith.constant 0 : index
    %193 = vector.load %arg23[%c0_123, %c0_124] : memref<16x32xf32, #tpu.memory_space<vmem>>, vector<16x8xf32>
    tpu.vector_store %arg23[%c0_123, %c0_124], %192 {strides = array<i32>} : memref<16x32xf32, #tpu.memory_space<vmem>>, vector<16x8xf32>,
    %c0_125 = arith.constant 0 : index
    %c8_126 = arith.constant 8 : index
    %194 = vector.load %arg22[%c0_125, %c8_126] : memref<16x96xf32, #tpu.memory_space<vmem>>, vector<16x8xf32>
    %c0_127 = arith.constant 0 : index
    %c40_128 = arith.constant 40 : index
    %195 = vector.load %arg22[%c0_127, %c40_128] : memref<16x96xf32, #tpu.memory_space<vmem>>, vector<16x8xf32>
    %c0_129 = arith.constant 0 : index
    %c72_130 = arith.constant 72 : index
    %196 = vector.load %arg22[%c0_129, %c72_130] : memref<16x96xf32, #tpu.memory_space<vmem>>, vector<16x8xf32>
    %cst_131 = arith.constant dense<0.000000e+00> : vector<16x16xf32>
    %197 = tpu.matmul %194, %195, %cst_131 {dimension_numbers = #tpu.dot_dimension_numbers<[1], [1], [0], [0], [0, 0, 1, 0], [], []>} : vector<16x8xf32>, vector<16x8xf32>, vector<16x16xf32> -> vector<16x16xf32>
    %cst_132 = arith.constant 0.353553385 : f32
    %198 = vector.broadcast %cst_132 : f32 to vector<16x16xf32>
    %199 = arith.mulf %197, %198 : vector<16x16xf32>
    %200 = arith.addf %199, %13 : vector<16x16xf32>
    %cst_133 = arith.constant dense<0xFF800000> : vector<16xf32>
    %201 = vector.multi_reduction <maximumf>, %200, %cst_133 [1] : vector<16x16xf32> to vector<16xf32>
    %202 = vector.shape_cast %201 : vector<16xf32> to vector<16x1xf32>
    %203 = vector.broadcast %202 : vector<16x1xf32> to vector<16x16xf32>
    %204 = arith.subf %200, %203 : vector<16x16xf32>
    %205 = math.exp %204 : vector<16x16xf32>
    %cst_134 = arith.constant dense<0.000000e+00> : vector<16xf32>
    %206 = vector.multi_reduction <add>, %205, %cst_134 [1] : vector<16x16xf32> to vector<16xf32>
    %207 = vector.shape_cast %206 : vector<16xf32> to vector<16x1xf32>
    %208 = vector.broadcast %207 : vector<16x1xf32> to vector<16x16xf32>
    %209 = arith.divf %205, %208 : vector<16x16xf32>
    %cst_135 = arith.constant dense<0.000000e+00> : vector<16x8xf32>
    %210 = tpu.matmul %209, %196, %cst_135 {dimension_numbers = #tpu.dot_dimension_numbers<[1], [0], [0], [1], [0, 0, 1, 1], [], []>} : vector<16x16xf32>, vector<16x8xf32>, vector<16x8xf32> -> vector<16x8xf32>
    %c0_136 = arith.constant 0 : index
    %c8_137 = arith.constant 8 : index
    %211 = vector.load %arg23[%c0_136, %c8_137] : memref<16x32xf32, #tpu.memory_space<vmem>>, vector<16x8xf32>
    tpu.vector_store %arg23[%c0_136, %c8_137], %210 {strides = array<i32>} : memref<16x32xf32, #tpu.memory_space<vmem>>, vector<16x8xf32>,
    %c0_138 = arith.constant 0 : index
    %c16_139 = arith.constant 16 : index
    %212 = vector.load %arg22[%c0_138, %c16_139] : memref<16x96xf32, #tpu.memory_space<vmem>>, vector<16x8xf32>
    %c0_140 = arith.constant 0 : index
    %c48_141 = arith.constant 48 : index
    %213 = vector.load %arg22[%c0_140, %c48_141] : memref<16x96xf32, #tpu.memory_space<vmem>>, vector<16x8xf32>
    %c0_142 = arith.constant 0 : index
    %c80_143 = arith.constant 80 : index
    %214 = vector.load %arg22[%c0_142, %c80_143] : memref<16x96xf32, #tpu.memory_space<vmem>>, vector<16x8xf32>
    %cst_144 = arith.constant dense<0.000000e+00> : vector<16x16xf32>
    %215 = tpu.matmul %212, %213, %cst_144 {dimension_numbers = #tpu.dot_dimension_numbers<[1], [1], [0], [0], [0, 0, 1, 0], [], []>} : vector<16x8xf32>, vector<16x8xf32>, vector<16x16xf32> -> vector<16x16xf32>
    %cst_145 = arith.constant 0.353553385 : f32
    %216 = vector.broadcast %cst_145 : f32 to vector<16x16xf32>
    %217 = arith.mulf %215, %216 : vector<16x16xf32>
    %218 = arith.addf %217, %13 : vector<16x16xf32>
    %cst_146 = arith.constant dense<0xFF800000> : vector<16xf32>
    %219 = vector.multi_reduction <maximumf>, %218, %cst_146 [1] : vector<16x16xf32> to vector<16xf32>
    %220 = vector.shape_cast %219 : vector<16xf32> to vector<16x1xf32>
    %221 = vector.broadcast %220 : vector<16x1xf32> to vector<16x16xf32>
    %222 = arith.subf %218, %221 : vector<16x16xf32>
    %223 = math.exp %222 : vector<16x16xf32>
    %cst_147 = arith.constant dense<0.000000e+00> : vector<16xf32>
    %224 = vector.multi_reduction <add>, %223, %cst_147 [1] : vector<16x16xf32> to vector<16xf32>
    %225 = vector.shape_cast %224 : vector<16xf32> to vector<16x1xf32>
    %226 = vector.broadcast %225 : vector<16x1xf32> to vector<16x16xf32>
    %227 = arith.divf %223, %226 : vector<16x16xf32>
    %cst_148 = arith.constant dense<0.000000e+00> : vector<16x8xf32>
    %228 = tpu.matmul %227, %214, %cst_148 {dimension_numbers = #tpu.dot_dimension_numbers<[1], [0], [0], [1], [0, 0, 1, 1], [], []>} : vector<16x16xf32>, vector<16x8xf32>, vector<16x8xf32> -> vector<16x8xf32>
    %c0_149 = arith.constant 0 : index
    %c16_150 = arith.constant 16 : index
    %229 = vector.load %arg23[%c0_149, %c16_150] : memref<16x32xf32, #tpu.memory_space<vmem>>, vector<16x8xf32>
    tpu.vector_store %arg23[%c0_149, %c16_150], %228 {strides = array<i32>} : memref<16x32xf32, #tpu.memory_space<vmem>>, vector<16x8xf32>,
    %c0_151 = arith.constant 0 : index
    %c24_152 = arith.constant 24 : index
    %230 = vector.load %arg22[%c0_151, %c24_152] : memref<16x96xf32, #tpu.memory_space<vmem>>, vector<16x8xf32>
    %c0_153 = arith.constant 0 : index
    %c56_154 = arith.constant 56 : index
    %231 = vector.load %arg22[%c0_153, %c56_154] : memref<16x96xf32, #tpu.memory_space<vmem>>, vector<16x8xf32>
    %c0_155 = arith.constant 0 : index
    %c88_156 = arith.constant 88 : index
    %232 = vector.load %arg22[%c0_155, %c88_156] : memref<16x96xf32, #tpu.memory_space<vmem>>, vector<16x8xf32>
    %cst_157 = arith.constant dense<0.000000e+00> : vector<16x16xf32>
    %233 = tpu.matmul %230, %231, %cst_157 {dimension_numbers = #tpu.dot_dimension_numbers<[1], [1], [0], [0], [0, 0, 1, 0], [], []>} : vector<16x8xf32>, vector<16x8xf32>, vector<16x16xf32> -> vector<16x16xf32>
    %cst_158 = arith.constant 0.353553385 : f32
    %234 = vector.broadcast %cst_158 : f32 to vector<16x16xf32>
    %235 = arith.mulf %233, %234 : vector<16x16xf32>
    %236 = arith.addf %235, %13 : vector<16x16xf32>
    %cst_159 = arith.constant dense<0xFF800000> : vector<16xf32>
    %237 = vector.multi_reduction <maximumf>, %236, %cst_159 [1] : vector<16x16xf32> to vector<16xf32>
    %238 = vector.shape_cast %237 : vector<16xf32> to vector<16x1xf32>
    %239 = vector.broadcast %238 : vector<16x1xf32> to vector<16x16xf32>
    %240 = arith.subf %236, %239 : vector<16x16xf32>
    %241 = math.exp %240 : vector<16x16xf32>
    %cst_160 = arith.constant dense<0.000000e+00> : vector<16xf32>
    %242 = vector.multi_reduction <add>, %241, %cst_160 [1] : vector<16x16xf32> to vector<16xf32>
    %243 = vector.shape_cast %242 : vector<16xf32> to vector<16x1xf32>
    %244 = vector.broadcast %243 : vector<16x1xf32> to vector<16x16xf32>
    %245 = arith.divf %241, %244 : vector<16x16xf32>
    %cst_161 = arith.constant dense<0.000000e+00> : vector<16x8xf32>
    %246 = tpu.matmul %245, %232, %cst_161 {dimension_numbers = #tpu.dot_dimension_numbers<[1], [0], [0], [1], [0, 0, 1, 1], [], []>} : vector<16x16xf32>, vector<16x8xf32>, vector<16x8xf32> -> vector<16x8xf32>
    %c0_162 = arith.constant 0 : index
    %c24_163 = arith.constant 24 : index
    %247 = vector.load %arg23[%c0_162, %c24_163] : memref<16x32xf32, #tpu.memory_space<vmem>>, vector<16x8xf32>
    tpu.vector_store %arg23[%c0_162, %c24_163], %246 {strides = array<i32>} : memref<16x32xf32, #tpu.memory_space<vmem>>, vector<16x8xf32>,
    %c0_164 = arith.constant 0 : index
    %c0_165 = arith.constant 0 : index
    %248 = vector.load %arg23[%c0_164, %c0_165] : memref<16x32xf32, #tpu.memory_space<vmem>>, vector<16x32xf32>
    %c1_166 = arith.constant 1 : index
    %c0_167 = arith.constant 0 : index
    %c0_168 = arith.constant 0 : index
    %249 = vector.load %arg7[%c1_166, %c0_167, %c0_168] : memref<2x32x32xf32, #tpu.memory_space<vmem>>, vector<1x32x32xf32>
    %250 = vector.shape_cast %249 : vector<1x32x32xf32> to vector<32x32xf32>
    %cst_169 = arith.constant dense<0.000000e+00> : vector<16x32xf32>
    %251 = tpu.matmul %248, %250, %cst_169 {dimension_numbers = #tpu.dot_dimension_numbers<[1], [0], [0], [1], [0, 0, 1, 1], [], []>} : vector<16x32xf32>, vector<32x32xf32>, vector<16x32xf32> -> vector<16x32xf32>
    %c1_170 = arith.constant 1 : index
    %c0_171 = arith.constant 0 : index
    %c0_172 = arith.constant 0 : index
    %252 = vector.load %arg8[%c1_170, %c0_171, %c0_172] : memref<2x1x32xf32, #tpu.memory_space<vmem>>, vector<1x1x32xf32>
    %253 = vector.shape_cast %252 : vector<1x1x32xf32> to vector<1x32xf32>
    %254 = vector.broadcast %253 : vector<1x32xf32> to vector<16x32xf32>
    %255 = arith.addf %251, %254 : vector<16x32xf32>
    %256 = arith.addf %167, %255 : vector<16x32xf32>
    %c1_173 = arith.constant 1 : index
    %c0_174 = arith.constant 0 : index
    %c0_175 = arith.constant 0 : index
    %257 = vector.load %arg9[%c1_173, %c0_174, %c0_175] : memref<2x1x32xf32, #tpu.memory_space<vmem>>, vector<1x1x32xf32>
    %258 = vector.shape_cast %257 : vector<1x1x32xf32> to vector<1x32xf32>
    %c1_176 = arith.constant 1 : index
    %c0_177 = arith.constant 0 : index
    %c0_178 = arith.constant 0 : index
    %259 = vector.load %arg10[%c1_176, %c0_177, %c0_178] : memref<2x1x32xf32, #tpu.memory_space<vmem>>, vector<1x1x32xf32>
    %260 = vector.shape_cast %259 : vector<1x1x32xf32> to vector<1x32xf32>
    %cst_179 = arith.constant dense<0.000000e+00> : vector<16xf32>
    %261 = vector.multi_reduction <add>, %256, %cst_179 [1] : vector<16x32xf32> to vector<16xf32>
    %262 = vector.shape_cast %261 : vector<16xf32> to vector<16x1xf32>
    %cst_180 = arith.constant 3.200000e+01 : f32
    %263 = vector.broadcast %cst_180 : f32 to vector<16x1xf32>
    %264 = arith.divf %262, %263 : vector<16x1xf32>
    %265 = vector.broadcast %264 : vector<16x1xf32> to vector<16x32xf32>
    %266 = arith.subf %256, %265 : vector<16x32xf32>
    %267 = arith.mulf %266, %266 : vector<16x32xf32>
    %cst_181 = arith.constant dense<0.000000e+00> : vector<16xf32>
    %268 = vector.multi_reduction <add>, %267, %cst_181 [1] : vector<16x32xf32> to vector<16xf32>
    %269 = vector.shape_cast %268 : vector<16xf32> to vector<16x1xf32>
    %cst_182 = arith.constant 3.200000e+01 : f32
    %270 = vector.broadcast %cst_182 : f32 to vector<16x1xf32>
    %271 = arith.divf %269, %270 : vector<16x1xf32>
    %cst_183 = arith.constant 9.99999974E-6 : f32
    %272 = vector.broadcast %cst_183 : f32 to vector<16x1xf32>
    %273 = arith.addf %271, %272 : vector<16x1xf32>
    %274 = math.rsqrt %273 : vector<16x1xf32>
    %275 = vector.broadcast %274 : vector<16x1xf32> to vector<16x32xf32>
    %276 = arith.mulf %266, %275 : vector<16x32xf32>
    %277 = vector.broadcast %258 : vector<1x32xf32> to vector<16x32xf32>
    %278 = arith.mulf %276, %277 : vector<16x32xf32>
    %279 = vector.broadcast %260 : vector<1x32xf32> to vector<16x32xf32>
    %280 = arith.addf %278, %279 : vector<16x32xf32>
    %c1_184 = arith.constant 1 : index
    %c0_185 = arith.constant 0 : index
    %c0_186 = arith.constant 0 : index
    %281 = vector.load %arg11[%c1_184, %c0_185, %c0_186] : memref<2x32x64xf32, #tpu.memory_space<vmem>>, vector<1x32x64xf32>
    %282 = vector.shape_cast %281 : vector<1x32x64xf32> to vector<32x64xf32>
    %cst_187 = arith.constant dense<0.000000e+00> : vector<16x64xf32>
    %283 = tpu.matmul %280, %282, %cst_187 {dimension_numbers = #tpu.dot_dimension_numbers<[1], [0], [0], [1], [0, 0, 1, 1], [], []>} : vector<16x32xf32>, vector<32x64xf32>, vector<16x64xf32> -> vector<16x64xf32>
    %c1_188 = arith.constant 1 : index
    %c0_189 = arith.constant 0 : index
    %c0_190 = arith.constant 0 : index
    %284 = vector.load %arg12[%c1_188, %c0_189, %c0_190] : memref<2x1x64xf32, #tpu.memory_space<vmem>>, vector<1x1x64xf32>
    %285 = vector.shape_cast %284 : vector<1x1x64xf32> to vector<1x64xf32>
    %286 = vector.broadcast %285 : vector<1x64xf32> to vector<16x64xf32>
    %287 = arith.addf %283, %286 : vector<16x64xf32>
    %cst_191 = arith.constant 0.000000e+00 : f32
    %288 = vector.broadcast %cst_191 : f32 to vector<16x64xf32>
    %289 = arith.maximumf %287, %288 : vector<16x64xf32>
    %c1_192 = arith.constant 1 : index
    %c0_193 = arith.constant 0 : index
    %c0_194 = arith.constant 0 : index
    %290 = vector.load %arg13[%c1_192, %c0_193, %c0_194] : memref<2x64x32xf32, #tpu.memory_space<vmem>>, vector<1x64x32xf32>
    %291 = vector.shape_cast %290 : vector<1x64x32xf32> to vector<64x32xf32>
    %cst_195 = arith.constant dense<0.000000e+00> : vector<16x32xf32>
    %292 = tpu.matmul %289, %291, %cst_195 {dimension_numbers = #tpu.dot_dimension_numbers<[1], [0], [0], [1], [0, 0, 1, 1], [], []>} : vector<16x64xf32>, vector<64x32xf32>, vector<16x32xf32> -> vector<16x32xf32>
    %c1_196 = arith.constant 1 : index
    %c0_197 = arith.constant 0 : index
    %c0_198 = arith.constant 0 : index
    %293 = vector.load %arg14[%c1_196, %c0_197, %c0_198] : memref<2x1x32xf32, #tpu.memory_space<vmem>>, vector<1x1x32xf32>
    %294 = vector.shape_cast %293 : vector<1x1x32xf32> to vector<1x32xf32>
    %295 = vector.broadcast %294 : vector<1x32xf32> to vector<16x32xf32>
    %296 = arith.addf %292, %295 : vector<16x32xf32>
    %297 = arith.addf %280, %296 : vector<16x32xf32>
    %c1_199 = arith.constant 1 : index
    %c0_200 = arith.constant 0 : index
    %c0_201 = arith.constant 0 : index
    %298 = vector.load %arg15[%c1_199, %c0_200, %c0_201] : memref<2x1x32xf32, #tpu.memory_space<vmem>>, vector<1x1x32xf32>
    %299 = vector.shape_cast %298 : vector<1x1x32xf32> to vector<1x32xf32>
    %c1_202 = arith.constant 1 : index
    %c0_203 = arith.constant 0 : index
    %c0_204 = arith.constant 0 : index
    %300 = vector.load %arg16[%c1_202, %c0_203, %c0_204] : memref<2x1x32xf32, #tpu.memory_space<vmem>>, vector<1x1x32xf32>
    %301 = vector.shape_cast %300 : vector<1x1x32xf32> to vector<1x32xf32>
    %cst_205 = arith.constant dense<0.000000e+00> : vector<16xf32>
    %302 = vector.multi_reduction <add>, %297, %cst_205 [1] : vector<16x32xf32> to vector<16xf32>
    %303 = vector.shape_cast %302 : vector<16xf32> to vector<16x1xf32>
    %cst_206 = arith.constant 3.200000e+01 : f32
    %304 = vector.broadcast %cst_206 : f32 to vector<16x1xf32>
    %305 = arith.divf %303, %304 : vector<16x1xf32>
    %306 = vector.broadcast %305 : vector<16x1xf32> to vector<16x32xf32>
    %307 = arith.subf %297, %306 : vector<16x32xf32>
    %308 = arith.mulf %307, %307 : vector<16x32xf32>
    %cst_207 = arith.constant dense<0.000000e+00> : vector<16xf32>
    %309 = vector.multi_reduction <add>, %308, %cst_207 [1] : vector<16x32xf32> to vector<16xf32>
    %310 = vector.shape_cast %309 : vector<16xf32> to vector<16x1xf32>
    %cst_208 = arith.constant 3.200000e+01 : f32
    %311 = vector.broadcast %cst_208 : f32 to vector<16x1xf32>
    %312 = arith.divf %310, %311 : vector<16x1xf32>
    %cst_209 = arith.constant 9.99999974E-6 : f32
    %313 = vector.broadcast %cst_209 : f32 to vector<16x1xf32>
    %314 = arith.addf %312, %313 : vector<16x1xf32>
    %315 = math.rsqrt %314 : vector<16x1xf32>
    %316 = vector.broadcast %315 : vector<16x1xf32> to vector<16x32xf32>
    %317 = arith.mulf %307, %316 : vector<16x32xf32>
    %318 = vector.broadcast %299 : vector<1x32xf32> to vector<16x32xf32>
    %319 = arith.mulf %317, %318 : vector<16x32xf32>
    %320 = vector.broadcast %301 : vector<1x32xf32> to vector<16x32xf32>
    %321 = arith.addf %319, %320 : vector<16x32xf32>
    %c0_210 = arith.constant 0 : index
    %c0_211 = arith.constant 0 : index
    %322 = vector.load %arg17[%c0_210, %c0_211] : memref<32x32xf32, #tpu.memory_space<vmem>>, vector<32x32xf32>
    %cst_212 = arith.constant dense<0.000000e+00> : vector<16x32xf32>
    %323 = tpu.matmul %321, %322, %cst_212 {dimension_numbers = #tpu.dot_dimension_numbers<[1], [0], [0], [1], [0, 0, 1, 1], [], []>} : vector<16x32xf32>, vector<32x32xf32>, vector<16x32xf32> -> vector<16x32xf32>
    %c0_213 = arith.constant 0 : index
    %c0_214 = arith.constant 0 : index
    %324 = vector.load %arg18[%c0_213, %c0_214] : memref<1x32xf32, #tpu.memory_space<vmem>>, vector<1x32xf32>
    %325 = vector.broadcast %324 : vector<1x32xf32> to vector<16x32xf32>
    %326 = arith.addf %323, %325 : vector<16x32xf32>
    %cst_215 = arith.constant 0.000000e+00 : f32
    %327 = vector.broadcast %cst_215 : f32 to vector<16x32xf32>
    %328 = arith.maximumf %326, %327 : vector<16x32xf32>
    %c0_216 = arith.constant 0 : index
    %c0_217 = arith.constant 0 : index
    %329 = vector.load %arg19[%c0_216, %c0_217] : memref<32x128xf32, #tpu.memory_space<vmem>>, vector<32x128xf32>
    %cst_218 = arith.constant dense<0.000000e+00> : vector<16x128xf32>
    %330 = tpu.matmul %328, %329, %cst_218 {dimension_numbers = #tpu.dot_dimension_numbers<[1], [0], [0], [1], [0, 0, 1, 1], [], []>} : vector<16x32xf32>, vector<32x128xf32>, vector<16x128xf32> -> vector<16x128xf32>
    %c0_219 = arith.constant 0 : index
    %c0_220 = arith.constant 0 : index
    %331 = vector.load %arg20[%c0_219, %c0_220] : memref<1x128xf32, #tpu.memory_space<vmem>>, vector<1x128xf32>
    %332 = vector.broadcast %331 : vector<1x128xf32> to vector<16x128xf32>
    %333 = arith.addf %330, %332 : vector<16x128xf32>
    %cst_221 = arith.constant dense<0xFF800000> : vector<16xf32>
    %334 = vector.multi_reduction <maximumf>, %333, %cst_221 [1] : vector<16x128xf32> to vector<16xf32>
    %335 = vector.shape_cast %334 : vector<16xf32> to vector<16x1xf32>
    %336 = vector.broadcast %335 : vector<16x1xf32> to vector<16x128xf32>
    %337 = arith.subf %333, %336 : vector<16x128xf32>
    %338 = math.exp %337 : vector<16x128xf32>
    %cst_222 = arith.constant dense<0.000000e+00> : vector<16xf32>
    %339 = vector.multi_reduction <add>, %338, %cst_222 [1] : vector<16x128xf32> to vector<16xf32>
    %340 = vector.shape_cast %339 : vector<16xf32> to vector<16x1xf32>
    %341 = math.log %340 : vector<16x1xf32>
    %342 = vector.broadcast %341 : vector<16x1xf32> to vector<16x128xf32>
    %343 = arith.subf %337, %342 : vector<16x128xf32>
    %c0_223 = arith.constant 0 : index
    %c0_224 = arith.constant 0 : index
    %344 = vector.load %arg21[%c0_223, %c0_224] : memref<16x128xf32, #tpu.memory_space<vmem>>, vector<16x128xf32>
    tpu.vector_store %arg21[%c0_223, %c0_224], %343 {strides = array<i32>} : memref<16x128xf32, #tpu.memory_space<vmem>>, vector<16x128xf32>,
    return
  }
  func.func @transform_0(%arg0: i32) -> (i32, i32) {
    %c0_i32 = arith.constant 0 : i32
    %c0_i32_0 = arith.constant 0 : i32
    %c0_i32_1 = arith.constant 0 : i32
    return %c0_i32, %c0_i32_0 : i32, i32
  }
  func.func @transform_1(%arg0: i32) -> (i32, i32) {
    %c0_i32 = arith.constant 0 : i32
    %c0_i32_0 = arith.constant 0 : i32
    %c0_i32_1 = arith.constant 0 : i32
    return %c0_i32, %c0_i32_0 : i32, i32
  }
  func.func @transform_2(%arg0: i32) -> (i32, i32) {
    %c0_i32 = arith.constant 0 : i32
    %c0_i32_0 = arith.constant 0 : i32
    %c0_i32_1 = arith.constant 0 : i32
    return %c0_i32, %c0_i32_0 : i32, i32
  }
  func.func @transform_3(%arg0: i32) -> (i32, i32) {
    %c0_i32 = arith.constant 0 : i32
    %c0_i32_0 = arith.constant 0 : i32
    %c0_i32_1 = arith.constant 0 : i32
    return %c0_i32, %c0_i32_0 : i32, i32
  }
  func.func @transform_4(%arg0: i32) -> (i32, i32, i32) {
    %c0_i32 = arith.constant 0 : i32
    %c0_i32_0 = arith.constant 0 : i32
    %c0_i32_1 = arith.constant 0 : i32
    %c0_i32_2 = arith.constant 0 : i32
    return %c0_i32, %c0_i32_0, %c0_i32_1 : i32, i32, i32
  }
  func.func @transform_5(%arg0: i32) -> (i32, i32, i32) {
    %c0_i32 = arith.constant 0 : i32
    %c0_i32_0 = arith.constant 0 : i32
    %c0_i32_1 = arith.constant 0 : i32
    %c0_i32_2 = arith.constant 0 : i32
    return %c0_i32, %c0_i32_0, %c0_i32_1 : i32, i32, i32
  }
  func.func @transform_6(%arg0: i32) -> (i32, i32, i32) {
    %c0_i32 = arith.constant 0 : i32
    %c0_i32_0 = arith.constant 0 : i32
    %c0_i32_1 = arith.constant 0 : i32
    %c0_i32_2 = arith.constant 0 : i32
    return %c0_i32, %c0_i32_0, %c0_i32_1 : i32, i32, i32
  }
  func.func @transform_7(%arg0: i32) -> (i32, i32, i32) {
    %c0_i32 = arith.constant 0 : i32
    %c0_i32_0 = arith.constant 0 : i32
    %c0_i32_1 = arith.constant 0 : i32
    %c0_i32_2 = arith.constant 0 : i32
    return %c0_i32, %c0_i32_0, %c0_i32_1 : i32, i32, i32
  }
  func.func @transform_8(%arg0: i32) -> (i32, i32, i32) {
    %c0_i32 = arith.constant 0 : i32
    %c0_i32_0 = arith.constant 0 : i32
    %c0_i32_1 = arith.constant 0 : i32
    %c0_i32_2 = arith.constant 0 : i32
    return %c0_i32, %c0_i32_0, %c0_i32_1 : i32, i32, i32
  }
  func.func @transform_9(%arg0: i32) -> (i32, i32, i32) {
    %c0_i32 = arith.constant 0 : i32
    %c0_i32_0 = arith.constant 0 : i32
    %c0_i32_1 = arith.constant 0 : i32
    %c0_i32_2 = arith.constant 0 : i32
    return %c0_i32, %c0_i32_0, %c0_i32_1 : i32, i32, i32
  }
  func.func @transform_10(%arg0: i32) -> (i32, i32, i32) {
    %c0_i32 = arith.constant 0 : i32
    %c0_i32_0 = arith.constant 0 : i32
    %c0_i32_1 = arith.constant 0 : i32
    %c0_i32_2 = arith.constant 0 : i32
    return %c0_i32, %c0_i32_0, %c0_i32_1 : i32, i32, i32
  }
  func.func @transform_11(%arg0: i32) -> (i32, i32, i32) {
    %c0_i32 = arith.constant 0 : i32
    %c0_i32_0 = arith.constant 0 : i32
    %c0_i32_1 = arith.constant 0 : i32
    %c0_i32_2 = arith.constant 0 : i32
    return %c0_i32, %c0_i32_0, %c0_i32_1 : i32, i32, i32
  }
  func.func @transform_12(%arg0: i32) -> (i32, i32, i32) {
    %c0_i32 = arith.constant 0 : i32
    %c0_i32_0 = arith.constant 0 : i32
    %c0_i32_1 = arith.constant 0 : i32
    %c0_i32_2 = arith.constant 0 : i32
    return %c0_i32, %c0_i32_0, %c0_i32_1 : i32, i32, i32
  }
  func.func @transform_13(%arg0: i32) -> (i32, i32, i32) {
    %c0_i32 = arith.constant 0 : i32
    %c0_i32_0 = arith.constant 0 : i32
    %c0_i32_1 = arith.constant 0 : i32
    %c0_i32_2 = arith.constant 0 : i32
    return %c0_i32, %c0_i32_0, %c0_i32_1 : i32, i32, i32
  }
  func.func @transform_14(%arg0: i32) -> (i32, i32, i32) {
    %c0_i32 = arith.constant 0 : i32
    %c0_i32_0 = arith.constant 0 : i32
    %c0_i32_1 = arith.constant 0 : i32
    %c0_i32_2 = arith.constant 0 : i32
    return %c0_i32, %c0_i32_0, %c0_i32_1 : i32, i32, i32
  }
  func.func @transform_15(%arg0: i32) -> (i32, i32, i32) {
    %c0_i32 = arith.constant 0 : i32
    %c0_i32_0 = arith.constant 0 : i32
    %c0_i32_1 = arith.constant 0 : i32
    %c0_i32_2 = arith.constant 0 : i32
    return %c0_i32, %c0_i32_0, %c0_i32_1 : i32, i32, i32
  }
  func.func @transform_16(%arg0: i32) -> (i32, i32) {
    %c0_i32 = arith.constant 0 : i32
    %c0_i32_0 = arith.constant 0 : i32
    %c0_i32_1 = arith.constant 0 : i32
    return %c0_i32, %c0_i32_0 : i32, i32
  }
  func.func @transform_17(%arg0: i32) -> (i32, i32) {
    %c0_i32 = arith.constant 0 : i32
    %c0_i32_0 = arith.constant 0 : i32
    %c0_i32_1 = arith.constant 0 : i32
    return %c0_i32, %c0_i32_0 : i32, i32
  }
  func.func @transform_18(%arg0: i32) -> (i32, i32) {
    %c0_i32 = arith.constant 0 : i32
    %c0_i32_0 = arith.constant 0 : i32
    %c0_i32_1 = arith.constant 0 : i32
    return %c0_i32, %c0_i32_0 : i32, i32
  }
  func.func @transform_19(%arg0: i32) -> (i32, i32) {
    %c0_i32 = arith.constant 0 : i32
    %c0_i32_0 = arith.constant 0 : i32
    %c0_i32_1 = arith.constant 0 : i32
    return %c0_i32, %c0_i32_0 : i32, i32
  }
  func.func @transform_20(%arg0: i32) -> (i32, i32) {
    %c0_i32 = arith.constant 0 : i32
    %c0_i32_0 = arith.constant 0 : i32
    %c0_i32_1 = arith.constant 0 : i32
    return %c0_i32, %c0_i32_0 : i32, i32
  }
}

</mosaic_0001>

<bundles_post_ra>
// kernel: model_forward.1
= control target key start
LH: loop header
LB: loop body
LE: loop exit
PB: predicated region body
PF: predicated region fallthrough
CT: control target
= control target key end

     0   :  { %v2170_v0 = vmov 0   ;;  %v67_v11 = vlaneseq  ;;  %vm88_vm0 = vcmask 457728   ;;  %v2171_v14 = vmov 0.0   ;;  %s2172_s26 = smov 96   ;;  %s2990_s29 = smov 64   ;;  %s2962_s0 = inlined_call_operand.vmem [shape: s32[16,1], index: 0, kind: input, shape index: {}]   ;;  %s2963_s2 = inlined_call_operand.vmem [shape: f32[56,32], index: 2, kind: input, shape index: {}]   ;;  %s2964_s4 = inlined_call_operand.vmem [shape: f32[2,32,96], index: 4, kind: input, shape index: {}]   ;;  %s2965_s5 = inlined_call_operand.vmem [shape: f32[2,1,96], index: 5, kind: input, shape index: {}]   ;;  %s2966_s3 = inlined_call_operand.vmem [shape: f32[64,32], index: 3, kind: input, shape index: {}]   ;;  %s2967_s1 = inlined_call_operand.vmem [shape: f32[16,16], index: 1, kind: input, shape index: {}]   ;;  %s2968_s7 = inlined_call_operand.vmem [shape: f32[2,1,32], index: 7, kind: input, shape index: {}]   ;;  %s2969_s6 = inlined_call_operand.vmem [shape: f32[2,32,32], index: 6, kind: input, shape index: {}]   ;;  %s2970_s8 = inlined_call_operand.vmem [shape: f32[2,1,32], index: 8, kind: input, shape index: {}]   ;;  %s2971_s9 = inlined_call_operand.vmem [shape: f32[2,1,32], index: 9, kind: input, shape index: {}]   ;;  %s2972_s11 = inlined_call_operand.vmem [shape: f32[2,1,64], index: 11, kind: input, shape index: {}]   ;;  %s2973_s10 = inlined_call_operand.vmem [shape: f32[2,32,64], index: 10, kind: input, shape index: {}]   ;;  %s2974_s12 = inlined_call_operand.vmem [shape: f32[2,64,32], index: 12, kind: input, shape index: {}]   ;;  %s2975_s13 = inlined_call_operand.vmem [shape: f32[2,1,32], index: 13, kind: input, shape index: {}]   ;;  %s2976_s14 = inlined_call_operand.vmem [shape: f32[2,1,32], index: 14, kind: input, shape index: {}]   ;;  %s2977_s15 = inlined_call_operand.vmem [shape: f32[2,1,32], index: 15, kind: input, shape index: {}]   ;;  %s2978_s17 = inlined_call_operand.vmem [shape: f32[1,32], index: 17, kind: input, shape index: {}]   ;;  %s2979_s16 = inlined_call_operand.vmem [shape: f32[32,32], index: 16, kind: input, shape index: {}]   ;;  %s2980_s18 = inlined_call_operand.vmem [shape: f32[32,128], index: 18, kind: input, shape index: {}]   ;;  %s2981_s19 = inlined_call_operand.vmem [shape: f32[1,128], index: 19, kind: input, shape index: {}]   ;;  %s2982_s20 = inlined_call_operand.vmem [shape: f32[16,128], index: 20, kind: output, shape index: {}]  }
   0x1   :  { %3001 = sst [smem:[#allocation4_spill]] %s2962_s0  ;;  %2019 = vset.pattern.permute.xlu0 %v2170_v0  ;;  %vm133_vm3 = vcmask 261120   ;;  %vm163_vm4 = vcmask 785408   ;;  %vm174_vm5 = vcmask 64512   ;;  %v2364_v38 = vld [vmem:[%s2967_s1] sm:$0xff]  ;;  %vm210_vm6 = vcmask 130048  }
   0x2   :  { %3002 = sst [smem:[#allocation5_spill]] %s2963_s2  ;;  %v68_v12 = vand.u32 127, %v67_v11  ;;  %v2371_v43 = vld [vmem:[%s2967_s1 + $0x8] sm:$0xff]  ;;  %s2174_s30 = smov 88  }
   0x3   :  { %3003 = sst [smem:[#allocation6_spill]] %s2964_s4  ;;  %s2175_s0 = smov 120  }
   0x4   :  { %3004 = sst [smem:[#allocation7_spill]] %s2965_s5  ;;  %s2995_s21 = smov 72  }
   0x5   :  { %3005 = sst [smem:[#allocation8_spill]] %s2966_s3  ;;  %s2177_s2 = smov 80  }
   0x6   :  { %s3006_s23 = sld [smem:[#allocation4_spill]]  ;;  %s2999_s24 = smov 104  }
   0x7   :  { %s3007_s25 = sld [smem:[#allocation5_spill]]  ;;  %s2988_s4 = smov 56  }
   0x8   :  { %s3009_s22 = sld [smem:[#allocation8_spill]]  ;;  %s2989_s27 = smov 48  }
   0x9   :  { %s3010_s5 = sld [smem:[#allocation7_spill]]  ;;  %s2993_s28 = smov 16  }
   0xa   :  { %s2997_s3 = smov 8  }
   0xc   :  { %v65_v1 = vld [vmem:[%s3006_s23] sm:$0xff]  ;;  %v66_v6 = vld [vmem:[%s3006_s23 + $0x8] sm:$0xff]  ;;  %s3008_s23 = sld [smem:[#allocation6_spill]] }
   0xd   :  { %v87_v2 = vld [vmem:[%s3007_s25 + $0x30] sm:$0xff]  ;;  %70 = vperm.xlu0 %2019, %v65_v1   ;;  %v86_v3 = vld [vmem:[%s3007_s25 + $0x28] sm:$0xff]  ;;  %v85_v4 = vld [vmem:[%s3007_s25 + $0x20] sm:$0xff] }
   0xe   :  { %104 = vmatpush.msra.mxu0 %v87_v2  ;;  %v84_v5 = vld [vmem:[%s3007_s25 + $0x18] sm:$0xff]  ;;  %v83_v7 = vld [vmem:[%s3007_s25 + $0x10] sm:$0xff]  ;;  %v82_v8 = vld [vmem:[%s3007_s25 + $0x8] sm:$0xff] }
   0xf   :  { %v81_v9 = vld [vmem:[%s3007_s25] sm:$0xff]  ;;  %s2987_s25 = smov 40  }
  0x10   :  { %105 = vmatpush.msra.mxu0 %v86_v3  ;;  %v120_v22 = vld [vmem:[%s3009_s22] sm:$0xff]  ;;  %s2991_s22 = smov 112  }
  0x11   :  { %v2060_v28 = vld [vmem:[%s3010_s5] ss:$0 sm:$0xff] }
  0x12   :  { %106 = vmatpush.msra.mxu0 %v85_v4  ;;  %v128_v10 = vld [vmem:[%s3008_s23 + $0x18] sm:$0xff]  ;;  %v127_v18 = vld [vmem:[%s3008_s23 + $0x10] sm:$0xff]  ;;  %v126_v19 = vld [vmem:[%s3008_s23 + $0x8] sm:$0xff] }
  0x13   :  { %1998 = vmatpush.msra.mxu1 %v128_v10  ;;  %v125_v20 = vld [vmem:[%s3008_s23] sm:$0xff] }
  0x14   :  { %107 = vmatpush.msra.mxu0 %v84_v5 }
  0x15   :  { %73 = vperm.xlu0 %2019, %v66_v6   ;;  %1999 = vmatpush.msra.mxu1 %v127_v18 }
  0x16   :  { %108 = vmatpush.msra.mxu0 %v83_v7 }
  0x17   :  { %2000 = vmatpush.msra.mxu1 %v126_v19 }
  0x18   :  { %109 = vmatpush.msra.mxu0 %v82_v8 }
  0x19   :  { %2001 = vmatpush.msra.mxu1 %v125_v20 }
  0x1a   :  { %110 = vmatpush.msra.mxu0 %v81_v9 }
  0x1c   :  { %152 = vmatpush.msrb.mxu0 %v128_v10 }
  0x1e   :  { %153 = vmatpush.msrb.mxu0 %v127_v18 }
  0x20   :  { %154 = vmatpush.msrb.mxu0 %v126_v19 }
  0x22   :  { %155 = vmatpush.msrb.mxu0 %v125_v20 }
  0x7f   :  { %v71_v13 = vpop.permute.xlu0 %70 }
  0x80   :  { %vm75_vm1 = vcmp.eq.s32.totalorder %v68_v12, %v71_v13 }
  0x81   :  { %v1898_v15 = vsel %vm75_vm1, 1.0, %v2171_v14 }
  0x82   :  { %1900 = vmatmul.msk.f32.vlgmr.msra.gmra.mxu0 %vm88_vm0, %v1898_v15 }
  0x87   :  { %v74_v16 = vpop.permute.xlu0 %73 }
  0x88   :  { %vm76_vm2 = vcmp.eq.s32.totalorder %v68_v12, %v74_v16 }
  0x89   :  { %v1899_v17 = vsel %vm76_vm2, 1.0, %v2171_v14 }
  0x8a   :  { %1901 = vmatmul.msk.f32.gmra.mxu0 %vm88_vm0, %v1899_v17 }
  0xff   :  { %v112_v21 = vpop.f32.mrf.mxu0 }
 0x100   :  { %v118_v23 = vmul.f32 5.656854, %v112_v21 }
 0x102   :  { %v2334_v24 = vadd.f32 %v120_v22, %v118_v23 }
 0x104   :  { %1902 = vmatmul.msk.f32.vlgmr.msrb.gmra.mxu0 %vm133_vm3, %v2334_v24 }
 0x107   :  { %v115_v25 = vpop.f32.mrf.mxu0 }
 0x108   :  { %v119_v26 = vmul.f32 5.656854, %v115_v25 }
 0x10a   :  { %v2338_v27 = vadd.f32 %v120_v22, %v119_v26 }
 0x10c   :  { %1903 = vmatmul.msk.f32.vlgmr.msra.gmra.mxu1 %vm133_vm3, %v2338_v27 }
 0x181   :  { %v157_v29 = vpop.f32.mrf.mxu0 }
 0x182   :  { %v158_v30 = vadd.f32 %v2060_v28, %v157_v29 }
 0x184   :  { %164 = vst.msk [vmem:[#allocation2] sm:$0xff] %vm163_vm4, %v158_v30 }
 0x189   :  { %v160_v31 = vpop.f32.mrf.mxu1 }
 0x18a   :  { %v161_v32 = vadd.f32 %v2060_v28, %v160_v31 }
 0x18b   :  { %v2351_v34 = vld [vmem:[#allocation2] sm:$0xff] }
 0x18c   :  { %165 = vst.msk [vmem:[#allocation2 + $0x8] sm:$0xff] %vm163_vm4, %v161_v32 }
 0x193   :  { %v2347_v33 = vld [vmem:[#allocation2 + $0x8] sm:$0xff] }
 0x194   :  { %172 = vrot.lane.b32.xlu1 %v2347_v33, %s2172_s26  ;;  %v2377_v47 = vpack.i.bf16 %v2351_v34, %v2347_v33 }
 0x19c   :  { %170 = vrot.lane.b32.xlu1 %v2351_v34, %s2172_s26 }
 0x206   :  { %v173_v35 = vpop.permute.xlu1 %172 }
 0x207   :  { %1904 = vmatpush.xpose.msk.msra.mxu2 %vm174_vm5, %v173_v35 }
 0x20e   :  { %v171_v36 = vpop.permute.xlu1 %170 }
 0x20f   :  { %1905 = vmatpush.xpose.msk.msra.mxu2 %vm174_vm5, %v171_v36 }
 0x212   :  { %1906 = vmatmul.msk.f32.vlgmr.msra.gmra.mxu2 %vm174_vm5, %v2351_v34 }
 0x21a   :  { %1907 = vmatmul.msk.f32.gmra.mxu2 %vm174_vm5, %v2347_v33 }
 0x295   :  { %v200_v37 = vpop.f32.mrf.mxu2 }
 0x296   :  { %v206_v39 = vmul.f32 0.35355338, %v200_v37 }
 0x298   :  { %v208_v40 = vadd.f32 %v206_v39, %v2364_v38 }
 0x29a   :  { %v211_v41 = vsel %vm210_vm6, %v208_v40, -inf }
 0x29b   :  { %212 = vmax.xlane.f32.xlu2 %v211_v41 }
 0x29d   :  { %v203_v42 = vpop.f32.mrf.mxu2 }
 0x29e   :  { %v207_v44 = vmul.f32 0.35355338, %v203_v42 }
 0x2a0   :  { %v209_v45 = vadd.f32 %v207_v44, %v2371_v43 }
 0x2a2   :  { %v214_v46 = vsel %vm210_vm6, %v209_v45, -inf }
 0x2a3   :  { %215 = vmax.xlane.f32.xlu2 %v214_v46 }
 0x2bb   :  { %2021 = vrot.lane.b32.xlu2 %v2377_v47, %s2990_s29 }
 0x2c3   :  { %306 = vrot.lane.b32.xlu2 %v2347_v33, %s2174_s30 }
 0x2cb   :  { %304 = vrot.lane.b32.xlu2 %v2351_v34, %s2174_s30 }
 0x2d3   :  { %300 = vrot.lane.b32.xlu2 %v2351_v34, %s2175_s0 }
 0x2db   :  { %588 = vrot.lane.b32.xlu2 %v2347_v33, %s2995_s21 }
 0x2e3   :  { %445 = vrot.lane.b32.xlu2 %v2351_v34, %s2177_s2 }
 0x2eb   :  { %441 = vrot.lane.b32.xlu2 %v2351_v34, %s2991_s22 }
 0x2f3   :  { %584 = vrot.lane.b32.xlu2 %v2347_v33, %s2999_s24 }
 0x30e   :  { %v213_v48 = vpop.xlane.xlu2 %212 }
 0x30f   :  { %v217_v49 = vsub.f32 %v208_v40, %v213_v48 }
 0x311   :  { %v219_v50 = vmul.f32 1.442695, %v217_v49 }
 0x313   :  { %2078 = vpow2.f32 %v219_v50 }
 0x316   :  { %v216_v51 = vpop.xlane.xlu2 %215 }
 0x317   :  { %v218_v52 = vsub.f32 %v209_v45, %v216_v51 }
 0x319   :  { %v2079_v53 = vpop.eup %2078  ;;  %v221_v54 = vmul.f32 1.442695, %v218_v52 }
 0x31a   :  { %v223_v55 = vsel %vm210_vm6, %v2079_v53, 0.0 }
 0x31b   :  { %2080 = vpow2.f32 %v221_v54  ;;  %224 = vadd.xlane.f32.xlu0 %v223_v55 }
 0x31e   :  { %v2022_v56 = vpop.permute.xlu2 %2021 }
 0x31f   :  { %v2023_v57 = vunpack.i.l.bf16 %v2022_v56  ;;  %v2024_v59 = vunpack.i.h.bf16 %v2022_v56 }
 0x321   :  { %v2081_v58 = vpop.eup %2080  ;;  %285 = vmatpush.msra.mxu3 %v2023_v57 }
 0x322   :  { %v226_v60 = vsel %vm210_vm6, %v2081_v58, 0.0 }
 0x323   :  { %227 = vadd.xlane.f32.xlu1 %v226_v60  ;;  %286 = vmatpush.msra.mxu3 %v2024_v59 }
 0x326   :  { %v307_v61 = vpop.permute.xlu2 %306 }
 0x327   :  { %1910 = vmatpush.xpose.msk.msrb.mxu3 %vm174_vm5, %v307_v61 }
 0x32e   :  { %v305_v62 = vpop.permute.xlu2 %304 }
 0x32f   :  { %302 = vrot.lane.b32.xlu0 %v2347_v33, %s2175_s0  ;;  %1911 = vmatpush.xpose.msk.msrb.mxu3 %vm174_vm5, %v305_v62 }
 0x336   :  { %v301_v3 = vpop.permute.xlu2 %300 }
 0x337   :  { %586 = vrot.lane.b32.xlu0 %v2351_v34, %s2995_s21  ;;  %s3017_s21 = smov 48  }
 0x33c   :  { %447 = vrot.lane.b32.xlu1 %v2347_v33, %s2177_s2 }
 0x33e   :  { %v589_v16 = vpop.permute.xlu2 %588 }
 0x33f   :  { %443 = vrot.lane.b32.xlu0 %v2347_v33, %s2991_s22  ;;  %s3019_s22 = smov 40  }
 0x344   :  { %582 = vrot.lane.b32.xlu1 %v2351_v34, %s2999_s24  ;;  %s3020_s24 = smov 16  }
 0x346   :  { %v446_v29 = vpop.permute.xlu2 %445 }
 0x34e   :  { %v442_v31 = vpop.permute.xlu2 %441 }
 0x356   :  { %v585_v34 = vpop.permute.xlu2 %584 }
 0x38e   :  { %v225_v63 = vpop.xlane.xlu0 %224 }
 0x38f   :  { %2082 = vrcp.f32 %v225_v63  ;;  %v240_v5 = vand.u32 2147483648, %v225_v63  ;;  %v238_v7 = vand.u32 2147483647, %v225_v63  ;;  %vm234_vm8 = vweird.f32 %v225_v63 }
 0x391   :  { %v241_v10 = vor.u32 1.1754944e-38, %v240_v5  ;;  %vm239_vm10 = vcmp.eq.f32.partialorder %v238_v7, 8.507059e+37 }
 0x395   :  { %v2083_v0 = vpop.eup %2082 }
 0x396   :  { %v230_v1 = vmul.f32 %v2083_v0, %v225_v63  ;;  %v228_v2 = vpop.xlane.xlu1 %227  ;;  %vm235_vm7 = vweird.f32 %v2083_v0 }
 0x397   :  { %2084 = vrcp.f32 %v228_v2  ;;  %vm236_vm9 = vmor %vm234_vm8, %vm235_vm7  ;;  %v255_v17 = vand.u32 2147483648, %v228_v2  ;;  %v253_v20 = vand.u32 2147483647, %v228_v2  ;;  %vm249_vm12 = vweird.f32 %v228_v2 }
 0x398   :  { %v231_v4 = vsub.f32 1.0, %v230_v1 }
 0x399   :  { %v256_v22 = vor.u32 1.1754944e-38, %v255_v17  ;;  %vm254_vm14 = vcmp.eq.f32.partialorder %v253_v20, 8.507059e+37 }
 0x39a   :  { %v232_v6 = vmul.f32 %v2083_v0, %v231_v4 }
 0x39c   :  { %v233_v8 = vadd.f32 %v2083_v0, %v232_v6 }
 0x39d   :  { %v2085_v9 = vpop.eup %2084 }
 0x39e   :  { %v245_v11 = vmul.f32 %v2085_v9, %v228_v2  ;;  %v237_v12 = vsel %vm236_vm9, %v2083_v0, %v233_v8  ;;  %vm250_vm11 = vweird.f32 %v2085_v9 }
 0x39f   :  { %v242_v13 = vsel %vm239_vm10, %v241_v10, %v237_v12  ;;  %vm251_vm13 = vmor %vm249_vm12, %vm250_vm11 }
 0x3a0   :  { %v246_v14 = vsub.f32 1.0, %v245_v11  ;;  %v243_v15 = vmul.f32 %v2079_v53, %v242_v13 }
 0x3a1   :  { %v303_v18 = vpop.permute.xlu0 %302 }
 0x3a2   :  { %v247_v19 = vmul.f32 %v2085_v9, %v246_v14  ;;  %1908 = vmatmul.msk.f32.vlgmr.msra.gmra.mxu3 %vm210_vm6, %v243_v15 }
 0x3a3   :  { %1922 = vmatpush.xpose.msk.msra.mxu3 %vm174_vm5, %v589_v16 }
 0x3a4   :  { %v248_v21 = vadd.f32 %v2085_v9, %v247_v19 }
 0x3a6   :  { %v252_v23 = vsel %vm251_vm13, %v2085_v9, %v248_v21 }
 0x3a7   :  { %v257_v25 = vsel %vm254_vm14, %v256_v22, %v252_v23 }
 0x3a8   :  { %v258_v26 = vmul.f32 %v2081_v58, %v257_v25 }
 0x3a9   :  { %v587_v28 = vpop.permute.xlu0 %586 }
 0x3aa   :  { %1909 = vmatmul.msk.f32.gmra.mxu3 %vm210_vm6, %v258_v26 }
 0x3ab   :  { %1923 = vmatpush.xpose.msk.msra.mxu3 %vm174_vm5, %v587_v28 }
 0x3ae   :  { %v448_v30 = vpop.permute.xlu1 %447 }
 0x3af   :  { %1916 = vmatpush.xpose.msk.msrb.mxu2 %vm174_vm5, %v448_v30 }
 0x3b1   :  { %v444_v32 = vpop.permute.xlu0 %443 }
 0x3b2   :  { %1912 = vmatmul.msk.f32.vlgmr.msrb.gmra.mxu3 %vm174_vm5, %v301_v3 }
 0x3b3   :  { %1917 = vmatpush.xpose.msk.msrb.mxu2 %vm174_vm5, %v446_v29 }
 0x3b6   :  { %1918 = vmatmul.msk.f32.vlgmr.msrb.gmra.mxu2 %vm174_vm5, %v442_v31  ;;  %v583_v33 = vpop.permute.xlu1 %582 }
 0x3ba   :  { %1913 = vmatmul.msk.f32.gmra.mxu3 %vm174_vm5, %v303_v18 }
 0x3be   :  { %1919 = vmatmul.msk.f32.gmra.mxu2 %vm174_vm5, %v444_v32 }
 0x3c2   :  { %1924 = vmatmul.msk.f32.vlgmr.msra.gmra.mxu3 %vm174_vm5, %v583_v33 }
 0x3ca   :  { %1925 = vmatmul.msk.f32.gmra.mxu3 %vm174_vm5, %v585_v34 }
 0x425   :  { %v288_v35 = vpop.f32.mrf.mxu3 }
 0x426   :  { %294 = vst.msk [vmem:[#allocation3] sm:$0xff] %vm174_vm5, %v288_v35 }
 0x42d   :  { %v291_v36 = vpop.f32.mrf.mxu3 }
 0x42e   :  { %295 = vst.msk [vmem:[#allocation3 + $0x8] sm:$0xff] %vm174_vm5, %v291_v36 }
 0x435   :  { %v333_v37 = vpop.f32.mrf.mxu3 }
 0x436   :  { %v339_v39 = vmul.f32 0.35355338, %v333_v37 }
 0x438   :  { %v341_v40 = vadd.f32 %v339_v39, %v2364_v38 }
 0x439   :  { %v474_v41 = vpop.f32.mrf.mxu2 }
 0x43a   :  { %v480_v42 = vmul.f32 0.35355338, %v474_v41  ;;  %v343_v44 = vsel %vm210_vm6, %v341_v40, -inf }
 0x43b   :  { %344 = vmax.xlane.f32.xlu1 %v343_v44 }
 0x43c   :  { %v482_v45 = vadd.f32 %v480_v42, %v2364_v38 }
 0x43d   :  { %v336_v46 = vpop.f32.mrf.mxu3 }
 0x43e   :  { %v340_v48 = vmul.f32 0.35355338, %v336_v46  ;;  %v484_v49 = vsel %vm210_vm6, %v482_v45, -inf }
 0x43f   :  { %485 = vmax.xlane.f32.xlu2 %v484_v49 }
 0x440   :  { %v342_v50 = vadd.f32 %v340_v48, %v2371_v43 }
 0x441   :  { %v477_v51 = vpop.f32.mrf.mxu2 }
 0x442   :  { %v481_v52 = vmul.f32 0.35355338, %v477_v51  ;;  %v346_v53 = vsel %vm210_vm6, %v342_v50, -inf }
 0x443   :  { %347 = vmax.xlane.f32.xlu0 %v346_v53 }
 0x444   :  { %v483_v56 = vadd.f32 %v481_v52, %v2371_v43 }
 0x445   :  { %v615_v54 = vpop.f32.mrf.mxu3 }
 0x446   :  { %v621_v55 = vmul.f32 0.35355338, %v615_v54  ;;  %v487_v59 = vsel %vm210_vm6, %v483_v56, -inf }
 0x448   :  { %v623_v57 = vadd.f32 %v621_v55, %v2364_v38 }
 0x44a   :  { %v625_v58 = vsel %vm210_vm6, %v623_v57, -inf }
 0x44b   :  { %626 = vmax.xlane.f32.xlu1 %v625_v58  ;;  %488 = vmax.xlane.f32.xlu0 %v487_v59 }
 0x44d   :  { %v618_v60 = vpop.f32.mrf.mxu3 }
 0x44e   :  { %v622_v61 = vmul.f32 0.35355338, %v618_v60 }
 0x450   :  { %v624_v62 = vadd.f32 %v622_v61, %v2371_v43 }
 0x452   :  { %v628_v63 = vsel %vm210_vm6, %v624_v62, -inf }
 0x453   :  { %629 = vmax.xlane.f32.xlu2 %v628_v63 }
 0x4ae   :  { %v345_v0 = vpop.xlane.xlu1 %344 }
 0x4af   :  { %v349_v1 = vsub.f32 %v341_v40, %v345_v0 }
 0x4b1   :  { %v351_v2 = vmul.f32 1.442695, %v349_v1 }
 0x4b2   :  { %v486_v3 = vpop.xlane.xlu2 %485 }
 0x4b3   :  { %2086 = vpow2.f32 %v351_v2  ;;  %v490_v4 = vsub.f32 %v482_v45, %v486_v3 }
 0x4b5   :  { %v492_v38 = vmul.f32 1.442695, %v490_v4 }
 0x4b6   :  { %v348_v5 = vpop.xlane.xlu0 %347 }
 0x4b7   :  { %2088 = vpow2.f32 %v492_v38  ;;  %v350_v6 = vsub.f32 %v342_v50, %v348_v5 }
 0x4b9   :  { %v2435_v7 = vpop.eup %2086  ;;  %v353_v8 = vmul.f32 1.442695, %v350_v6 }
 0x4ba   :  { %v355_v9 = vsel %vm210_vm6, %v2435_v7, 0.0 }
 0x4bb   :  { %2090 = vpow2.f32 %v353_v8  ;;  %356 = vadd.xlane.f32.xlu1 %v355_v9 }
 0x4bd   :  { %v2439_v43 = vpop.eup %2088 }
 0x4be   :  { %v627_v10 = vpop.xlane.xlu1 %626  ;;  %v489_v11 = vpop.xlane.xlu0 %488  ;;  %v496_v12 = vsel %vm210_vm6, %v2439_v43, 0.0 }
 0x4bf   :  { %v631_v13 = vsub.f32 %v623_v57, %v627_v10  ;;  %v491_v14 = vsub.f32 %v483_v56, %v489_v11  ;;  %497 = vadd.xlane.f32.xlu2 %v496_v12 }
 0x4c1   :  { %v2443_v15 = vpop.eup %2090  ;;  %v633_v16 = vmul.f32 1.442695, %v631_v13  ;;  %v494_v17 = vmul.f32 1.442695, %v491_v14 }
 0x4c2   :  { %v358_v18 = vsel %vm210_vm6, %v2443_v15, 0.0 }
 0x4c3   :  { %2092 = vpow2.f32 %v633_v16  ;;  %359 = vadd.xlane.f32.xlu0 %v358_v18 }
 0x4c4   :  { %2094 = vpow2.f32 %v494_v17 }
 0x4c6   :  { %v630_v19 = vpop.xlane.xlu2 %629 }
 0x4c7   :  { %v632_v20 = vsub.f32 %v624_v62, %v630_v19 }
 0x4c9   :  { %v2447_v21 = vpop.eup %2092  ;;  %v635_v22 = vmul.f32 1.442695, %v632_v20 }
 0x4ca   :  { %v2449_v23 = vpop.eup %2094  ;;  %v637_v25 = vsel %vm210_vm6, %v2447_v21, 0.0 }
 0x4cb   :  { %2096 = vpow2.f32 %v635_v22  ;;  %638 = vadd.xlane.f32.xlu1 %v637_v25  ;;  %v499_v26 = vsel %vm210_vm6, %v2449_v23, 0.0 }
 0x4cc   :  { %500 = vadd.xlane.f32.xlu2 %v499_v26 }
 0x4d1   :  { %v2455_v28 = vpop.eup %2096 }
 0x4d2   :  { %v640_v29 = vsel %vm210_vm6, %v2455_v28, 0.0 }
 0x4d3   :  { %641 = vadd.xlane.f32.xlu1 %v640_v29 }
 0x4d7   :  { %2026 = vrot.lane.b32.xlu0 %v2377_v47, %s2988_s4  ;;  %s3021_s4 = smov 8  }
 0x4e4   :  { %2031 = vrot.lane.b32.xlu2 %v2377_v47, %s2989_s27 }
 0x4ec   :  { %2036 = vrot.lane.b32.xlu1 %v2377_v47, %s2987_s25  ;;  %s2185_s25 = smov 24  }
 0x52e   :  { %v357_v30 = vpop.xlane.xlu1 %356 }
 0x52f   :  { %2098 = vrcp.f32 %v357_v30  ;;  %v372_v51 = vand.u32 2147483648, %v357_v30  ;;  %vm366_vm7 = vweird.f32 %v357_v30  ;;  %v370_v53 = vand.u32 2147483647, %v357_v30 }
 0x531   :  { %v373_v59 = vor.u32 1.1754944e-38, %v372_v51  ;;  %vm371_vm10 = vcmp.eq.f32.partialorder %v370_v53, 8.507059e+37 }
 0x532   :  { %v498_v31 = vpop.xlane.xlu2 %497 }
 0x533   :  { %2100 = vrcp.f32 %v498_v31  ;;  %v513_v48 = vand.u32 2147483648, %v498_v31  ;;  %vm507_vm1 = vweird.f32 %v498_v31  ;;  %v511_v50 = vand.u32 2147483647, %v498_v31 }
 0x535   :  { %v2099_v32 = vpop.eup %2098  ;;  %v514_v56 = vor.u32 1.1754944e-38, %v513_v48  ;;  %vm512_vm9 = vcmp.eq.f32.partialorder %v511_v50, 8.507059e+37 }
 0x536   :  { %v362_v33 = vmul.f32 %v2099_v32, %v357_v30  ;;  %v2465_v34 = vpop.xlane.xlu0 %359  ;;  %vm367_vm0 = vweird.f32 %v2099_v32 }
 0x537   :  { %2102 = vrcp.f32 %v2465_v34  ;;  %vm2475_vm8 = vmor %vm366_vm7, %vm367_vm0  ;;  %vm381_vm13 = vweird.f32 %v2465_v34  ;;  %v387_v13 = vand.u32 2147483648, %v2465_v34  ;;  %v385_v18 = vand.u32 2147483647, %v2465_v34 }
 0x538   :  { %v363_v36 = vsub.f32 1.0, %v362_v33 }
 0x539   :  { %v2101_v35 = vpop.eup %2100  ;;  %v388_v25 = vor.u32 1.1754944e-38, %v387_v13 }
 0x53a   :  { %v503_v37 = vmul.f32 %v2101_v35, %v498_v31  ;;  %v364_v41 = vmul.f32 %v2099_v32, %v363_v36  ;;  %vm508_vm15 = vweird.f32 %v2101_v35 }
 0x53b   :  { %vm509_vm2 = vmor %vm507_vm1, %vm508_vm15 }
 0x53c   :  { %v504_v39 = vsub.f32 1.0, %v503_v37  ;;  %v365_v49 = vadd.f32 %v2099_v32, %v364_v41 }
 0x53d   :  { %v2468_v40 = vpop.eup %2102 }
 0x53e   :  { %v505_v42 = vmul.f32 %v2101_v35, %v504_v39  ;;  %v2470_v44 = vpop.xlane.xlu1 %638  ;;  %v377_v47 = vmul.f32 %v2468_v40, %v2465_v34  ;;  %v369_v58 = vsel %vm2475_vm8, %v2099_v32, %v365_v49  ;;  %vm382_vm11 = vweird.f32 %v2468_v40 }
 0x53f   :  { %v501_v45 = vpop.xlane.xlu2 %500  ;;  %v374_v5 = vsel %vm371_vm10, %v373_v59, %v369_v58  ;;  %vm383_vm15 = vmor %vm381_vm13, %vm382_vm11  ;;  %v654_v37 = vand.u32 2147483648, %v2470_v44  ;;  %vm648_vm8 = vweird.f32 %v2470_v44  ;;  %v652_v39 = vand.u32 2147483647, %v2470_v44  ;;  %v724_v58 = vld [vmem:[%s2969_s6 + $0x18] sm:$0xff]  ;;  %v723_v59 = vld [vmem:[%s2969_s6 + $0x10] sm:$0xff] }
 0x540   :  { %v506_v46 = vadd.f32 %v2101_v35, %v505_v42  ;;  %2104 = vrcp.f32 %v501_v45  ;;  %v378_v52 = vsub.f32 1.0, %v377_v47  ;;  %v528_v4 = vand.u32 2147483648, %v501_v45  ;;  %747 = vmatpush.msra.mxu2 %v724_v58 }
 0x541   :  { %2106 = vrcp.f32 %v2470_v44  ;;  %v526_v10 = vand.u32 2147483647, %v501_v45  ;;  %vm522_vm14 = vweird.f32 %v501_v45  ;;  %v655_v41 = vor.u32 1.1754944e-38, %v654_v37  ;;  %v823_v37 = vld [vmem:[%s2973_s10] sm:$0xff] }
 0x542   :  { %v510_v54 = vsel %vm509_vm2, %v2101_v35, %v506_v46  ;;  %v379_v61 = vmul.f32 %v2468_v40, %v378_v52  ;;  %v529_v19 = vor.u32 1.1754944e-38, %v528_v4  ;;  %vm386_vm2 = vcmp.eq.f32.partialorder %v385_v18, 8.507059e+37  ;;  %748 = vmatpush.msra.mxu2 %v723_v59  ;;  %v2063_v59 = vld [vmem:[%s2971_s9] ss:$0 sm:$0xff] }
 0x543   :  { %v515_v60 = vsel %vm512_vm9, %v514_v56, %v510_v54  ;;  %vm527_vm1 = vcmp.eq.f32.partialorder %v526_v10, 8.507059e+37  ;;  %vm653_vm10 = vcmp.eq.f32.partialorder %v652_v39, 8.507059e+37 }
 0x544   :  { %v516_v9 = vmul.f32 %v2439_v43, %v515_v60  ;;  %v380_v12 = vadd.f32 %v2468_v40, %v379_v61  ;;  %v375_v43 = vmul.f32 %v2435_v7, %v374_v5  ;;  %v722_v60 = vld [vmem:[%s2969_s6 + $0x8] sm:$0xff]  ;;  %v721_v61 = vld [vmem:[%s2969_s6] sm:$0xff] }
 0x545   :  { %749 = vmatpush.msra.mxu2 %v722_v60  ;;  %v2061_v5 = vld [vmem:[%s2968_s7] ss:$0 sm:$0xff] }
 0x546   :  { %v2105_v57 = vpop.eup %2104  ;;  %v2482_v0 = vpop.xlane.xlu1 %641  ;;  %v384_v22 = vsel %vm383_vm15, %v2468_v40, %v380_v12  ;;  %vm434_vm15 = vcmask 130112  }
 0x547   :  { %v518_v62 = vmul.f32 %v2105_v57, %v501_v45  ;;  %v2032_v63 = vpop.permute.xlu2 %2031  ;;  %v2107_v2 = vpop.eup %2106  ;;  %2108 = vrcp.f32 %v2482_v0  ;;  %vm523_vm12 = vweird.f32 %v2105_v57  ;;  %v389_v30 = vsel %vm386_vm2, %v388_v25, %v384_v22  ;;  %750 = vmatpush.msra.mxu2 %v721_v61 }
 0x548   :  { %v2033_v1 = vunpack.i.l.bf16 %v2032_v63  ;;  %v2034_v6 = vunpack.i.h.bf16 %v2032_v63  ;;  %v644_v14 = vmul.f32 %v2107_v2, %v2470_v44  ;;  %vm524_vm0 = vmor %vm522_vm14, %vm523_vm12  ;;  %v390_v34 = vmul.f32 %v2443_v15, %v389_v30 }
 0x549   :  { %v519_v3 = vsub.f32 1.0, %v518_v62  ;;  %v2027_v38 = vpop.permute.xlu0 %2026  ;;  %vm649_vm7 = vweird.f32 %v2107_v2  ;;  %v669_v46 = vand.u32 2147483648, %v2482_v0  ;;  %vm663_vm12 = vweird.f32 %v2482_v0 }
 0x54a   :  { %558 = vmatpush.msra.mxu0 %v2033_v1  ;;  %v2028_v8 = vunpack.i.l.bf16 %v2027_v38  ;;  %v2029_v16 = vunpack.i.h.bf16 %v2027_v38  ;;  %v645_v26 = vsub.f32 1.0, %v644_v14  ;;  %vm650_vm9 = vmor %vm648_vm8, %vm649_vm7  ;;  %v667_v44 = vand.u32 2147483647, %v2482_v0 }
 0x54b   :  { %v520_v11 = vmul.f32 %v2105_v57, %v519_v3  ;;  %v670_v51 = vor.u32 1.1754944e-38, %v669_v46  ;;  %v866_v46 = vld [vmem:[%s2974_s12 + $0x20] sm:$0xff] }
 0x54c   :  { %559 = vmatpush.msra.mxu0 %v2034_v6  ;;  %417 = vmatpush.msrb.mxu1 %v2028_v8  ;;  %v646_v32 = vmul.f32 %v2107_v2, %v645_v26  ;;  %vm668_vm14 = vcmp.eq.f32.partialorder %v667_v44, 8.507059e+37  ;;  %v865_v44 = vld [vmem:[%s2974_s12 + $0x18] sm:$0xff] }
 0x54d   :  { %1920 = vmatmul.msk.f32.vlgmr.msra.gmra.mxu0 %vm210_vm6, %v516_v9  ;;  %v521_v17 = vadd.f32 %v2105_v57, %v520_v11  ;;  %v2109_v7 = vpop.eup %2108 }
 0x54e   :  { %418 = vmatpush.msrb.mxu1 %v2029_v16  ;;  %v659_v33 = vmul.f32 %v2109_v7, %v2482_v0  ;;  %v647_v35 = vadd.f32 %v2107_v2, %v646_v32  ;;  %vm664_vm11 = vweird.f32 %v2109_v7  ;;  %v2186_v16 = vmov 32.0  }
 0x54f   :  { %1914 = vmatmul.msk.f32.vlgmr.msrb.gmra.mxu1 %vm210_vm6, %v375_v43  ;;  %v525_v20 = vsel %vm524_vm0, %v2105_v57, %v521_v17  ;;  %vm665_vm13 = vmor %vm663_vm12, %vm664_vm11  ;;  %vm575_vm0 = vcmask 195712   ;;  %2110 = vrcp.f32 %v2186_v16  ;;  %v2065_v16 = vld [vmem:[%s2975_s13] ss:$0 sm:$0xff] }
 0x550   :  { %v530_v29 = vsel %vm527_vm1, %v529_v19, %v525_v20  ;;  %v660_v36 = vsub.f32 1.0, %v659_v33  ;;  %vm716_vm1 = vcmask 261312  }
 0x551   :  { %v531_v31 = vmul.f32 %v2449_v23, %v530_v29  ;;  %v651_v23 = vsel %vm650_vm9, %v2107_v2, %v647_v35  ;;  %v825_v35 = vld [vmem:[%s2973_s10 + $0x10] sm:$0xff] }
 0x552   :  { %v661_v40 = vmul.f32 %v2109_v7, %v660_v36  ;;  %v656_v47 = vsel %vm653_vm10, %v655_v41, %v651_v23  ;;  %v824_v36 = vld [vmem:[%s2973_s10 + $0x8] sm:$0xff]  ;;  %v869_v41 = vld [vmem:[%s2974_s12 + $0x38] sm:$0xff] }
 0x553   :  { %v657_v49 = vmul.f32 %v2447_v21, %v656_v47  ;;  %889 = vmatpush.msrb.mxu3 %v869_v41  ;;  %v867_v47 = vld [vmem:[%s2974_s12 + $0x28] sm:$0xff] }
 0x554   :  { %v662_v15 = vadd.f32 %v2109_v7, %v661_v40 }
 0x555   :  { %1921 = vmatmul.msk.f32.gmra.mxu0 %vm210_vm6, %v531_v31  ;;  %v2111_v43 = vpop.eup %2110 }
 0x556   :  { %v666_v50 = vsel %vm665_vm13, %v2109_v7, %v662_v15  ;;  %v769_v17 = vmul.f32 32.0, %v2111_v43  ;;  %vm773_vm2 = vweird.f32 %v2111_v43  ;;  %vm874_vm13 = vcmask 523264  }
 0x557   :  { %1915 = vmatmul.msk.f32.gmra.mxu1 %vm210_vm6, %v390_v34  ;;  %v671_v52 = vsel %vm668_vm14, %v670_v51, %v666_v50  ;;  %v826_v34 = vld [vmem:[%s2973_s10 + $0x18] sm:$0xff] }
 0x558   :  { %v672_v53 = vmul.f32 %v2455_v28, %v671_v52  ;;  %v770_v18 = vsub.f32 1.0, %v769_v17  ;;  %849 = vmatpush.msrb.mxu0 %v826_v34 }
 0x55a   :  { %v771_v19 = vmul.f32 %v2111_v43, %v770_v18  ;;  %850 = vmatpush.msrb.mxu0 %v825_v35 }
 0x55c   :  { %v772_v20 = vadd.f32 %v2111_v43, %v771_v19  ;;  %851 = vmatpush.msrb.mxu0 %v824_v36 }
 0x55e   :  { %v2037_v42 = vpop.permute.xlu1 %2036  ;;  %v2547_v22 = vsel %vm773_vm2, %v2111_v43, %v772_v20  ;;  %852 = vmatpush.msrb.mxu0 %v823_v37  ;;  %v1937_v37 = vld [vmem:[%s3008_s23 + $0x38] sm:$0xff] }
 0x55f   :  { %v2038_v45 = vunpack.i.l.bf16 %v2037_v42  ;;  %v2039_v48 = vunpack.i.h.bf16 %v2037_v42  ;;  %v868_v42 = vld [vmem:[%s2974_s12 + $0x30] sm:$0xff] }
 0x560   :  { %890 = vmatpush.msrb.mxu3 %v868_v42 }
 0x561   :  { %699 = vmatpush.msra.mxu1 %v2038_v45 }
 0x562   :  { %891 = vmatpush.msrb.mxu3 %v867_v47 }
 0x563   :  { %700 = vmatpush.msra.mxu1 %v2039_v48 }
 0x564   :  { %1926 = vmatmul.msk.f32.vlgmr.msra.gmra.mxu1 %vm210_vm6, %v657_v49  ;;  %892 = vmatpush.msrb.mxu3 %v866_v46 }
 0x565   :  { %990 = vmatpush.msrb.mxu1 %v1937_v37 }
 0x566   :  { %893 = vmatpush.msrb.mxu3 %v865_v44 }
 0x56c   :  { %1927 = vmatmul.msk.f32.gmra.mxu1 %vm210_vm6, %v672_v53 }
 0x5ca   :  { %v561_v54 = vpop.f32.mrf.mxu0 }
 0x5cb   :  { %569 = vrot.lane.b32.xlu0 %v561_v54, %s2993_s28 }
 0x5cc   :  { %v420_v55 = vpop.f32.mrf.mxu1 }
 0x5d2   :  { %v564_v21 = vpop.f32.mrf.mxu0 }
 0x5d3   :  { %571 = vrot.lane.b32.xlu1 %v564_v21, %s2993_s28  ;;  %428 = vrot.lane.b32.xlu0 %v420_v55, %s2997_s3 }
 0x5d4   :  { %v423_v56 = vpop.f32.mrf.mxu1 }
 0x5db   :  { %430 = vrot.lane.b32.xlu0 %v423_v56, %s2997_s3  ;;  %v2062_v56 = vld [vmem:[%s2970_s8] ss:$0 sm:$0xff]  ;;  %s3014_s3 = smov 72  }
 0x5e1   :  { %v702_v57 = vpop.f32.mrf.mxu1 }
 0x5e2   :  { %710 = vrot.lane.b32.xlu2 %v702_v57, %s2185_s25 }
 0x5e9   :  { %v705_v28 = vpop.f32.mrf.mxu1 }
 0x5ea   :  { %712 = vrot.lane.b32.xlu2 %v705_v28, %s2185_s25 }
 0x63c   :  { %v711_v63 = vpop.permute.xlu2 %710 }
 0x63d   :  { %v570_v62 = vpop.permute.xlu0 %569 }
 0x644   :  { %v713_v3 = vpop.permute.xlu2 %712 }
 0x645   :  { %v429_v0 = vpop.permute.xlu0 %428  ;;  %v572_v2 = vpop.permute.xlu1 %571 }
 0x646   :  { %435 = vst.msk [vmem:[#allocation3] sm:$0xff] %vm434_vm15, %v429_v0 }
 0x647   :  { %576 = vst.msk [vmem:[#allocation3] sm:$0xff] %vm575_vm0, %v570_v62 }
 0x648   :  { %717 = vst.msk [vmem:[#allocation3] sm:$0xff] %vm716_vm1, %v711_v63 }
 0x64d   :  { %v431_v1 = vpop.permute.xlu0 %430 }
 0x64e   :  { %436 = vst.msk [vmem:[#allocation3 + $0x8] sm:$0xff] %vm434_vm15, %v431_v1 }
 0x64f   :  { %577 = vst.msk [vmem:[#allocation3 + $0x8] sm:$0xff] %vm575_vm0, %v572_v2  ;;  %v719_v4 = vld [vmem:[#allocation3] sm:$0xff] }
 0x650   :  { %718 = vst.msk [vmem:[#allocation3 + $0x8] sm:$0xff] %vm716_vm1, %v713_v3  ;;  %1928 = vmatmul.msk.f32.vlgmr.msra.gmra.mxu2 %vm133_vm3, %v719_v4 }
 0x657   :  { %v720_v38 = vld [vmem:[#allocation3 + $0x8] sm:$0xff] }
 0x658   :  { %1929 = vmatmul.msk.f32.gmra.mxu2 %vm133_vm3, %v720_v38  ;;  %v864_v38 = vld [vmem:[%s2974_s12 + $0x10] sm:$0xff] }
 0x659   :  { %894 = vmatpush.msrb.mxu3 %v864_v38 }
 0x6d3   :  { %v752_v6 = vpop.f32.mrf.mxu2 }
 0x6d4   :  { %v753_v8 = vadd.f32 %v2061_v5, %v752_v6  ;;  %v862_v6 = vld [vmem:[%s2974_s12] sm:$0xff] }
 0x6d6   :  { %v758_v9 = vadd.f32 %v753_v8, %v2334_v24  ;;  %v2064_v8 = vld [vmem:[%s2972_s11] ss:$0 sm:$0xff] }
 0x6d8   :  { %v762_v10 = vsel %vm133_vm3, %v758_v9, 0.0 }
 0x6d9   :  { %763 = vadd.xlane.f32.xlu0 %v762_v10 }
 0x6db   :  { %v755_v11 = vpop.f32.mrf.mxu2 }
 0x6dc   :  { %v756_v12 = vadd.f32 %v2061_v5, %v755_v11  ;;  %v863_v5 = vld [vmem:[%s2974_s12 + $0x8] sm:$0xff] }
 0x6dd   :  { %895 = vmatpush.msrb.mxu3 %v863_v5 }
 0x6de   :  { %v759_v13 = vadd.f32 %v756_v12, %v2338_v27 }
 0x6df   :  { %896 = vmatpush.msrb.mxu3 %v862_v6 }
 0x6e0   :  { %v765_v14 = vsel %vm133_vm3, %v759_v13, 0.0 }
 0x6e1   :  { %766 = vadd.xlane.f32.xlu1 %v765_v14 }
 0x74c   :  { %v764_v24 = vpop.xlane.xlu0 %763 }
 0x74d   :  { %v775_v25 = vmul.f32 %v2547_v22, %v764_v24 }
 0x74f   :  { %v777_v26 = vsub.f32 %v758_v9, %v775_v25 }
 0x751   :  { %v779_v29 = vmul.f32 %v777_v26, %v777_v26 }
 0x753   :  { %v781_v27 = vsel %vm133_vm3, %v779_v29, 0.0 }
 0x754   :  { %782 = vadd.xlane.f32.xlu2 %v781_v27  ;;  %v767_v7 = vpop.xlane.xlu1 %766 }
 0x755   :  { %v776_v30 = vmul.f32 %v2547_v22, %v767_v7 }
 0x757   :  { %v778_v31 = vsub.f32 %v759_v13, %v776_v30 }
 0x759   :  { %v780_v32 = vmul.f32 %v778_v31, %v778_v31 }
 0x75b   :  { %v784_v33 = vsel %vm133_vm3, %v780_v32, 0.0 }
 0x75c   :  { %785 = vadd.xlane.f32.xlu0 %v784_v33 }
 0x7c7   :  { %v783_v39 = vpop.xlane.xlu2 %782 }
 0x7c8   :  { %v787_v23 = vmul.f32 %v783_v39, %v2547_v22  ;;  %v1936_v39 = vld [vmem:[%s3008_s23 + $0x30] sm:$0xff] }
 0x7c9   :  { %991 = vmatpush.msrb.mxu1 %v1936_v39 }
 0x7ca   :  { %v789_v40 = vadd.f32 1e-05, %v787_v23  ;;  %v1935_v23 = vld [vmem:[%s3008_s23 + $0x28] sm:$0xff] }
 0x7cb   :  { %992 = vmatpush.msrb.mxu1 %v1935_v23 }
 0x7cc   :  { %2112 = vrsqrt.f32 %v789_v40  ;;  %vm797_vm8 = vweird.f32 %v789_v40 }
 0x7cf   :  { %v786_v45 = vpop.xlane.xlu0 %785 }
 0x7d0   :  { %v788_v15 = vmul.f32 %v786_v45, %v2547_v22 }
 0x7d2   :  { %v2113_v48 = vpop.eup %2112  ;;  %v790_v49 = vadd.f32 1e-05, %v788_v15 }
 0x7d3   :  { %v792_v50 = vmul.f32 %v2113_v48, %v789_v40  ;;  %vm798_vm7 = vweird.f32 %v2113_v48  ;;  %v1934_v40 = vld [vmem:[%s3008_s23 + $0x20] sm:$0xff]  ;;  %s3018_s23 = smov 56  }
 0x7d4   :  { %2114 = vrsqrt.f32 %v790_v49  ;;  %vm799_vm9 = vmor %vm797_vm8, %vm798_vm7  ;;  %vm807_vm11 = vweird.f32 %v790_v49  ;;  %993 = vmatpush.msrb.mxu1 %v1934_v40 }
 0x7d5   :  { %v793_v51 = vmul.f32 %v2113_v48, %v792_v50 }
 0x7d7   :  { %v794_v52 = vmul.f32 0.5, %v793_v51 }
 0x7d9   :  { %v795_v53 = vsub.f32 1.5, %v794_v52 }
 0x7da   :  { %v2115_v54 = vpop.eup %2114 }
 0x7db   :  { %v796_v55 = vmul.f32 %v2113_v48, %v795_v53  ;;  %v802_v21 = vmul.f32 %v2115_v54, %v790_v49  ;;  %vm808_vm10 = vweird.f32 %v2115_v54 }
 0x7dc   :  { %vm809_vm12 = vmor %vm807_vm11, %vm808_vm10 }
 0x7dd   :  { %v800_v57 = vsel %vm799_vm9, %v2113_v48, %v796_v55  ;;  %v803_v28 = vmul.f32 %v2115_v54, %v802_v21  ;;  %v2066_v55 = vld [vmem:[%s2976_s14] ss:$0 sm:$0xff] }
 0x7de   :  { %v811_v58 = vmul.f32 %v800_v57, %v777_v26 }
 0x7df   :  { %v804_v60 = vmul.f32 0.5, %v803_v28  ;;  %v2067_v28 = vld [vmem:[%s2977_s15] ss:$0 sm:$0xff] }
 0x7e0   :  { %v816_v61 = vmul.f32 %v2062_v56, %v811_v58 }
 0x7e1   :  { %v805_v62 = vsub.f32 1.5, %v804_v60 }
 0x7e2   :  { %v821_v63 = vadd.f32 %v2063_v59, %v816_v61 }
 0x7e3   :  { %v806_v0 = vmul.f32 %v2115_v54, %v805_v62 }
 0x7e4   :  { %1930 = vmatmul.msk.f32.vlgmr.msrb.gmra.mxu0 %vm133_vm3, %v821_v63 }
 0x7e5   :  { %v810_v1 = vsel %vm809_vm12, %v2115_v54, %v806_v0 }
 0x7e6   :  { %v812_v2 = vmul.f32 %v810_v1, %v778_v31 }
 0x7e8   :  { %v817_v3 = vmul.f32 %v2062_v56, %v812_v2 }
 0x7ea   :  { %v822_v4 = vadd.f32 %v2063_v59, %v817_v3  ;;  %v2068_v3 = vld [vmem:[%s3010_s5 + $0x1] ss:$0 sm:$0xff]  ;;  %s3013_s5 = smov 104  }
 0x7ec   :  { %1931 = vmatmul.msk.f32.gmra.mxu0 %vm133_vm3, %v822_v4 }
 0x861   :  { %v854_v9 = vpop.f32.mrf.mxu0 }
 0x862   :  { %v855_v10 = vadd.f32 %v2064_v8, %v854_v9 }
 0x864   :  { %v860_v11 = vmax.f32 %v855_v10, 0.0 }
 0x866   :  { %1932 = vmatmul.msk.f32.vlgmr.msrb.gmra.mxu3 %vm874_vm13, %v860_v11 }
 0x869   :  { %v857_v12 = vpop.f32.mrf.mxu0 }
 0x86a   :  { %v858_v13 = vadd.f32 %v2064_v8, %v857_v12 }
 0x86c   :  { %v861_v14 = vmax.f32 %v858_v13, 0.0 }
 0x86e   :  { %1933 = vmatmul.msk.f32.gmra.mxu3 %vm874_vm13, %v861_v14 }
 0x8e9   :  { %v898_v43 = vpop.f32.mrf.mxu3 }
 0x8ea   :  { %v899_v17 = vadd.f32 %v2065_v16, %v898_v43 }
 0x8ec   :  { %v904_v18 = vadd.f32 %v899_v17, %v821_v63 }
 0x8ee   :  { %v908_v19 = vsel %vm133_vm3, %v904_v18, 0.0 }
 0x8ef   :  { %909 = vadd.xlane.f32.xlu1 %v908_v19 }
 0x8f1   :  { %v901_v20 = vpop.f32.mrf.mxu3 }
 0x8f2   :  { %v902_v24 = vadd.f32 %v2065_v16, %v901_v20 }
 0x8f4   :  { %v905_v25 = vadd.f32 %v902_v24, %v822_v4 }
 0x8f6   :  { %v911_v26 = vsel %vm133_vm3, %v905_v25, 0.0 }
 0x8f7   :  { %912 = vadd.xlane.f32.xlu2 %v911_v26 }
 0x962   :  { %v910_v29 = vpop.xlane.xlu1 %909 }
 0x963   :  { %v914_v27 = vmul.f32 %v910_v29, %v2547_v22 }
 0x965   :  { %v916_v7 = vsub.f32 %v904_v18, %v914_v27 }
 0x967   :  { %v918_v30 = vmul.f32 %v916_v7, %v916_v7 }
 0x969   :  { %v920_v31 = vsel %vm133_vm3, %v918_v30, 0.0 }
 0x96a   :  { %v913_v32 = vpop.xlane.xlu2 %912  ;;  %921 = vadd.xlane.f32.xlu0 %v920_v31 }
 0x96b   :  { %v915_v33 = vmul.f32 %v913_v32, %v2547_v22 }
 0x96d   :  { %v917_v34 = vsub.f32 %v905_v25, %v915_v33 }
 0x96f   :  { %v919_v35 = vmul.f32 %v917_v34, %v917_v34 }
 0x971   :  { %v923_v36 = vsel %vm133_vm3, %v919_v35, 0.0 }
 0x972   :  { %924 = vadd.xlane.f32.xlu1 %v923_v36 }
 0x9dd   :  { %v922_v41 = vpop.xlane.xlu0 %921 }
 0x9de   :  { %v926_v42 = vmul.f32 %v922_v41, %v2547_v22 }
 0x9e0   :  { %v928_v47 = vadd.f32 1e-05, %v926_v42 }
 0x9e2   :  { %2116 = vrsqrt.f32 %v928_v47  ;;  %vm936_vm2 = vweird.f32 %v928_v47 }
 0x9e5   :  { %v925_v45 = vpop.xlane.xlu1 %924 }
 0x9e6   :  { %v927_v15 = vmul.f32 %v925_v45, %v2547_v22 }
 0x9e8   :  { %v2117_v46 = vpop.eup %2116  ;;  %v929_v48 = vadd.f32 1e-05, %v927_v15 }
 0x9e9   :  { %v931_v49 = vmul.f32 %v2117_v46, %v928_v47  ;;  %vm937_vm14 = vweird.f32 %v2117_v46 }
 0x9ea   :  { %2118 = vrsqrt.f32 %v929_v48  ;;  %vm938_vm7 = vmor %vm936_vm2, %vm937_vm14  ;;  %vm946_vm9 = vweird.f32 %v929_v48 }
 0x9eb   :  { %v932_v44 = vmul.f32 %v2117_v46, %v931_v49 }
 0x9ed   :  { %v933_v50 = vmul.f32 0.5, %v932_v44 }
 0x9ef   :  { %v934_v51 = vsub.f32 1.5, %v933_v50 }
 0x9f0   :  { %v2119_v52 = vpop.eup %2118 }
 0x9f1   :  { %v935_v53 = vmul.f32 %v2117_v46, %v934_v51  ;;  %v941_v54 = vmul.f32 %v2119_v52, %v929_v48  ;;  %vm947_vm8 = vweird.f32 %v2119_v52 }
 0x9f2   :  { %vm948_vm10 = vmor %vm946_vm9, %vm947_vm8 }
 0x9f3   :  { %v939_v21 = vsel %vm938_vm7, %v2117_v46, %v935_v53  ;;  %v942_v56 = vmul.f32 %v2119_v52, %v941_v54 }
 0x9f4   :  { %v950_v57 = vmul.f32 %v939_v21, %v916_v7  ;;  %v2168_v7 = vld [vmem:[%s2967_s1] sm:$0xff] }
 0x9f5   :  { %v943_v58 = vmul.f32 0.5, %v942_v56 }
 0x9f6   :  { %v955_v59 = vmul.f32 %v2066_v55, %v950_v57 }
 0x9f7   :  { %v944_v60 = vsub.f32 1.5, %v943_v58 }
 0x9f8   :  { %v2633_v61 = vadd.f32 %v2067_v28, %v955_v59 }
 0x9f9   :  { %v945_v62 = vmul.f32 %v2119_v52, %v944_v60 }
 0x9fa   :  { %1939 = vmatmul.msk.f32.vlgmr.msrb.gmra.mxu1 %vm133_vm3, %v2633_v61 }
 0x9fb   :  { %v949_v63 = vsel %vm948_vm10, %v2119_v52, %v945_v62 }
 0x9fc   :  { %v951_v0 = vmul.f32 %v949_v63, %v917_v34  ;;  %v2169_v34 = vld [vmem:[%s2967_s1 + $0x8] sm:$0xff]  ;;  %s3016_s1 = smov 64  }
 0x9fe   :  { %v956_v1 = vmul.f32 %v2066_v55, %v951_v0 }
 0xa00   :  { %v2637_v2 = vadd.f32 %v2067_v28, %v956_v1 }
 0xa02   :  { %1940 = vmatmul.msk.f32.gmra.mxu1 %vm133_vm3, %v2637_v2 }
 0xa77   :  { %v995_v4 = vpop.f32.mrf.mxu1 }
 0xa78   :  { %v996_v38 = vadd.f32 %v2068_v3, %v995_v4 }
 0xa7a   :  { %1001 = vst.msk [vmem:[#allocation2] sm:$0xff] %vm163_vm4, %v996_v38 }
 0xa7f   :  { %v998_v5 = vpop.f32.mrf.mxu1 }
 0xa80   :  { %v999_v6 = vadd.f32 %v2068_v3, %v998_v5 }
 0xa81   :  { %v2645_v8 = vld [vmem:[#allocation2] sm:$0xff] }
 0xa82   :  { %1002 = vst.msk [vmem:[#allocation2 + $0x8] sm:$0xff] %vm163_vm4, %v999_v6  ;;  %1007 = vrot.lane.b32.xlu1 %v2645_v8, %s2172_s26 }
 0xa89   :  { %v2650_v9 = vld [vmem:[#allocation2 + $0x8] sm:$0xff] }
 0xa8a   :  { %1279 = vrot.lane.b32.xlu1 %v2645_v8, %s2177_s2  ;;  %1141 = vrot.lane.b32.xlu0 %v2650_v9, %s2174_s30  ;;  %v2712_v59 = vpack.i.bf16 %v2645_v8, %v2650_v9 }
 0xa8b   :  { %1009 = vrot.lane.b32.xlu2 %v2650_v9, %s2172_s26  ;;  %s3015_s26 = smov 112  }
 0xa92   :  { %1137 = vrot.lane.b32.xlu1 %v2650_v9, %s2175_s0  ;;  %1139 = vrot.lane.b32.xlu0 %v2645_v8, %s2174_s30 }
 0xa93   :  { %1135 = vrot.lane.b32.xlu2 %v2645_v8, %s2175_s0 }
 0xa9a   :  { %1415 = vrot.lane.b32.xlu1 %v2645_v8, %s3013_s5  ;;  %1281 = vrot.lane.b32.xlu0 %v2650_v9, %s2177_s2 }
 0xa9b   :  { %1421 = vrot.lane.b32.xlu2 %v2650_v9, %s3014_s3 }
 0xaa2   :  { %1419 = vrot.lane.b32.xlu0 %v2645_v8, %s3014_s3 }
 0xaa3   :  { %1275 = vrot.lane.b32.xlu2 %v2645_v8, %s3015_s26 }
 0xaaa   :  { %1277 = vrot.lane.b32.xlu0 %v2650_v9, %s3015_s26 }
 0xaab   :  { %1417 = vrot.lane.b32.xlu2 %v2650_v9, %s3013_s5 }
 0xae5   :  { %v1010_v10 = vpop.permute.xlu2 %1009 }
 0xae6   :  { %1941 = vmatpush.xpose.msk.msrb.mxu2 %vm174_vm5, %v1010_v10 }
 0xaed   :  { %v1136_v12 = vpop.permute.xlu2 %1135 }
 0xaf4   :  { %v1008_v11 = vpop.permute.xlu1 %1007 }
 0xaf5   :  { %1942 = vmatpush.xpose.msk.msrb.mxu2 %vm174_vm5, %v1008_v11  ;;  %v1422_v43 = vpop.permute.xlu2 %1421 }
 0xaf8   :  { %1943 = vmatmul.msk.f32.vlgmr.msrb.gmra.mxu2 %vm174_vm5, %v2645_v8 }
 0xafc   :  { %v1142_v13 = vpop.permute.xlu0 %1141  ;;  %v1280_v14 = vpop.permute.xlu1 %1279 }
 0xafd   :  { %1947 = vmatpush.xpose.msk.msra.mxu3 %vm174_vm5, %v1142_v13  ;;  %v1276_v19 = vpop.permute.xlu2 %1275 }
 0xb00   :  { %1944 = vmatmul.msk.f32.gmra.mxu2 %vm174_vm5, %v2650_v9 }
 0xb04   :  { %v1140_v16 = vpop.permute.xlu0 %1139  ;;  %v1138_v18 = vpop.permute.xlu1 %1137 }
 0xb05   :  { %1948 = vmatpush.xpose.msk.msra.mxu3 %vm174_vm5, %v1140_v16  ;;  %v1418_v26 = vpop.permute.xlu2 %1417 }
 0xb08   :  { %1949 = vmatmul.msk.f32.vlgmr.msra.gmra.mxu3 %vm174_vm5, %v1136_v12 }
 0xb09   :  { %1959 = vmatpush.xpose.msk.msrb.mxu3 %vm174_vm5, %v1422_v43 }
 0xb0c   :  { %v1282_v17 = vpop.permute.xlu0 %1281  ;;  %v1416_v24 = vpop.permute.xlu1 %1415 }
 0xb0d   :  { %1953 = vmatpush.xpose.msk.msra.mxu2 %vm174_vm5, %v1282_v17 }
 0xb10   :  { %1950 = vmatmul.msk.f32.gmra.mxu3 %vm174_vm5, %v1138_v18 }
 0xb11   :  { %1954 = vmatpush.xpose.msk.msra.mxu2 %vm174_vm5, %v1280_v14 }
 0xb14   :  { %v1420_v20 = vpop.permute.xlu0 %1419  ;;  %1955 = vmatmul.msk.f32.vlgmr.msra.gmra.mxu2 %vm174_vm5, %v1276_v19 }
 0xb15   :  { %1960 = vmatpush.xpose.msk.msrb.mxu3 %vm174_vm5, %v1420_v20 }
 0xb18   :  { %1961 = vmatmul.msk.f32.vlgmr.msrb.gmra.mxu3 %vm174_vm5, %v1416_v24 }
 0xb1c   :  { %v1278_v25 = vpop.permute.xlu0 %1277 }
 0xb1d   :  { %1956 = vmatmul.msk.f32.gmra.mxu2 %vm174_vm5, %v1278_v25 }
 0xb20   :  { %1962 = vmatmul.msk.f32.gmra.mxu3 %vm174_vm5, %v1418_v26 }
 0xb7b   :  { %v1036_v29 = vpop.f32.mrf.mxu2 }
 0xb7c   :  { %v1042_v27 = vmul.f32 0.35355338, %v1036_v29 }
 0xb7e   :  { %v1044_v30 = vadd.f32 %v2168_v7, %v1042_v27 }
 0xb80   :  { %v1046_v31 = vsel %vm210_vm6, %v1044_v30, -inf }
 0xb81   :  { %1047 = vmax.xlane.f32.xlu1 %v1046_v31 }
 0xb83   :  { %v1039_v32 = vpop.f32.mrf.mxu2 }
 0xb84   :  { %v1043_v33 = vmul.f32 0.35355338, %v1039_v32 }
 0xb86   :  { %v1045_v35 = vadd.f32 %v2169_v34, %v1043_v33 }
 0xb88   :  { %v1049_v36 = vsel %vm210_vm6, %v1045_v35, -inf }
 0xb89   :  { %1050 = vmax.xlane.f32.xlu2 %v1049_v36 }
 0xb8b   :  { %v1168_v37 = vpop.f32.mrf.mxu3 }
 0xb8c   :  { %v1174_v39 = vmul.f32 0.35355338, %v1168_v37 }
 0xb8e   :  { %v1176_v23 = vadd.f32 %v2168_v7, %v1174_v39 }
 0xb90   :  { %v1178_v40 = vsel %vm210_vm6, %v1176_v23, -inf }
 0xb91   :  { %1179 = vmax.xlane.f32.xlu0 %v1178_v40 }
 0xb93   :  { %v1171_v41 = vpop.f32.mrf.mxu3 }
 0xb94   :  { %v1175_v42 = vmul.f32 0.35355338, %v1171_v41 }
 0xb96   :  { %v1177_v47 = vadd.f32 %v2169_v34, %v1175_v42 }
 0xb97   :  { %v1308_v45 = vpop.f32.mrf.mxu2 }
 0xb98   :  { %v1314_v15 = vmul.f32 0.35355338, %v1308_v45  ;;  %v1181_v46 = vsel %vm210_vm6, %v1177_v47, -inf }
 0xb99   :  { %1182 = vmax.xlane.f32.xlu1 %v1181_v46 }
 0xb9a   :  { %v1316_v48 = vadd.f32 %v2168_v7, %v1314_v15 }
 0xb9b   :  { %v1448_v49 = vpop.f32.mrf.mxu3 }
 0xb9c   :  { %v1454_v44 = vmul.f32 0.35355338, %v1448_v49  ;;  %v1318_v50 = vsel %vm210_vm6, %v1316_v48, -inf }
 0xb9d   :  { %1319 = vmax.xlane.f32.xlu2 %v1318_v50 }
 0xb9e   :  { %v1456_v51 = vadd.f32 %v2168_v7, %v1454_v44 }
 0xba0   :  { %v1311_v52 = vpop.f32.mrf.mxu2  ;;  %v1458_v53 = vsel %vm210_vm6, %v1456_v51, -inf }
 0xba1   :  { %v1315_v54 = vmul.f32 0.35355338, %v1311_v52  ;;  %1459 = vmax.xlane.f32.xlu0 %v1458_v53 }
 0xba3   :  { %v1451_v55 = vpop.f32.mrf.mxu3  ;;  %v1317_v21 = vadd.f32 %v2169_v34, %v1315_v54 }
 0xba4   :  { %v1455_v56 = vmul.f32 0.35355338, %v1451_v55 }
 0xba5   :  { %v1321_v57 = vsel %vm210_vm6, %v1317_v21, -inf }
 0xba6   :  { %1322 = vmax.xlane.f32.xlu1 %v1321_v57  ;;  %v1457_v28 = vadd.f32 %v2169_v34, %v1455_v56 }
 0xba8   :  { %v1461_v58 = vsel %vm210_vm6, %v1457_v28, -inf }
 0xba9   :  { %1462 = vmax.xlane.f32.xlu2 %v1461_v58 }
 0xbc1   :  { %2041 = vrot.lane.b32.xlu2 %v2712_v59, %s3016_s1 }
 0xbf4   :  { %v1048_v60 = vpop.xlane.xlu1 %1047 }
 0xbf5   :  { %v1052_v62 = vsub.f32 %v1044_v30, %v1048_v60 }
 0xbf7   :  { %v1054_v63 = vmul.f32 1.442695, %v1052_v62 }
 0xbf9   :  { %2120 = vpow2.f32 %v1054_v63 }
 0xbfc   :  { %v1051_v0 = vpop.xlane.xlu2 %1050 }
 0xbfd   :  { %v1053_v1 = vsub.f32 %v1045_v35, %v1051_v0 }
 0xbff   :  { %v2716_v3 = vpop.eup %2120  ;;  %v1056_v4 = vmul.f32 1.442695, %v1053_v1 }
 0xc00   :  { %v1058_v38 = vsel %vm210_vm6, %v2716_v3, 0.0 }
 0xc01   :  { %2122 = vpow2.f32 %v1056_v4  ;;  %1059 = vadd.xlane.f32.xlu0 %v1058_v38 }
 0xc04   :  { %v1180_v5 = vpop.xlane.xlu0 %1179 }
 0xc05   :  { %v1184_v6 = vsub.f32 %v1176_v23, %v1180_v5 }
 0xc07   :  { %v2720_v8 = vpop.eup %2122  ;;  %v1186_v9 = vmul.f32 1.442695, %v1184_v6 }
 0xc08   :  { %v1061_v10 = vsel %vm210_vm6, %v2720_v8, 0.0 }
 0xc09   :  { %2124 = vpow2.f32 %v1186_v9  ;;  %1062 = vadd.xlane.f32.xlu2 %v1061_v10 }
 0xc0c   :  { %v1183_v11 = vpop.xlane.xlu1 %1182 }
 0xc0d   :  { %v1185_v12 = vsub.f32 %v1177_v47, %v1183_v11 }
 0xc0f   :  { %v2724_v13 = vpop.eup %2124  ;;  %v1188_v14 = vmul.f32 1.442695, %v1185_v12 }
 0xc10   :  { %v1320_v16 = vpop.xlane.xlu2 %1319  ;;  %v1190_v43 = vsel %vm210_vm6, %v2724_v13, 0.0 }
 0xc11   :  { %2126 = vpow2.f32 %v1188_v14  ;;  %v1324_v17 = vsub.f32 %v1316_v48, %v1320_v16  ;;  %1191 = vadd.xlane.f32.xlu1 %v1190_v43 }
 0xc13   :  { %v1326_v18 = vmul.f32 1.442695, %v1324_v17 }
 0xc14   :  { %v1460_v19 = vpop.xlane.xlu0 %1459 }
 0xc15   :  { %2128 = vpow2.f32 %v1326_v18  ;;  %v1464_v20 = vsub.f32 %v1456_v51, %v1460_v19 }
 0xc17   :  { %v2728_v24 = vpop.eup %2126  ;;  %v1466_v25 = vmul.f32 1.442695, %v1464_v20 }
 0xc18   :  { %v1193_v26 = vsel %vm210_vm6, %v2728_v24, 0.0 }
 0xc19   :  { %2130 = vpow2.f32 %v1466_v25  ;;  %1194 = vadd.xlane.f32.xlu0 %v1193_v26  ;;  %v1323_v29 = vpop.xlane.xlu1 %1322 }
 0xc1a   :  { %v1325_v27 = vsub.f32 %v1317_v21, %v1323_v29 }
 0xc1b   :  { %v2732_v7 = vpop.eup %2128 }
 0xc1c   :  { %v1328_v30 = vmul.f32 1.442695, %v1325_v27  ;;  %v1463_v31 = vpop.xlane.xlu2 %1462  ;;  %v1330_v32 = vsel %vm210_vm6, %v2732_v7, 0.0 }
 0xc1d   :  { %1331 = vadd.xlane.f32.xlu1 %v1330_v32  ;;  %v1465_v34 = vsub.f32 %v1457_v28, %v1463_v31 }
 0xc1e   :  { %2132 = vpow2.f32 %v1328_v30 }
 0xc1f   :  { %v2736_v33 = vpop.eup %2130  ;;  %v1468_v36 = vmul.f32 1.442695, %v1465_v34 }
 0xc20   :  { %v1470_v35 = vsel %vm210_vm6, %v2736_v33, 0.0 }
 0xc21   :  { %2051 = vrot.lane.b32.xlu2 %v2712_v59, %s3017_s21  ;;  %1471 = vadd.xlane.f32.xlu0 %v1470_v35  ;;  %2134 = vpow2.f32 %v1468_v36 }
 0xc24   :  { %v2042_v37 = vpop.permute.xlu2 %2041  ;;  %v2742_v39 = vpop.eup %2132 }
 0xc25   :  { %v2043_v23 = vunpack.i.l.bf16 %v2042_v37  ;;  %v2044_v40 = vunpack.i.h.bf16 %v2042_v37  ;;  %v1333_v41 = vsel %vm210_vm6, %v2742_v39, 0.0 }
 0xc27   :  { %1120 = vmatpush.msra.mxu0 %v2043_v23  ;;  %v2746_v42 = vpop.eup %2134 }
 0xc28   :  { %v1473_v47 = vsel %vm210_vm6, %v2746_v42, 0.0 }
 0xc29   :  { %1121 = vmatpush.msra.mxu0 %v2044_v40  ;;  %1334 = vadd.xlane.f32.xlu0 %v1333_v41 }
 0xc31   :  { %1474 = vadd.xlane.f32.xlu0 %v1473_v47 }
 0xc36   :  { %2046 = vrot.lane.b32.xlu1 %v2712_v59, %s3018_s23 }
 0xc45   :  { %2056 = vrot.lane.b32.xlu0 %v2712_v59, %s3019_s22 }
 0xc74   :  { %v1060_v45 = vpop.xlane.xlu0 %1059 }
 0xc75   :  { %2136 = vrcp.f32 %v1060_v45  ;;  %v1075_v44 = vand.u32 2147483648, %v1060_v45  ;;  %v1073_v51 = vand.u32 2147483647, %v1060_v45  ;;  %vm1069_vm11 = vweird.f32 %v1060_v45 }
 0xc77   :  { %v1076_v54 = vor.u32 1.1754944e-38, %v1075_v44  ;;  %vm1074_vm14 = vcmp.eq.f32.partialorder %v1073_v51, 8.507059e+37 }
 0xc7b   :  { %v2137_v15 = vpop.eup %2136 }
 0xc7c   :  { %v1065_v46 = vmul.f32 %v2137_v15, %v1060_v45  ;;  %v1063_v48 = vpop.xlane.xlu2 %1062  ;;  %vm1070_vm4 = vweird.f32 %v2137_v15 }
 0xc7d   :  { %2138 = vrcp.f32 %v1063_v48  ;;  %vm1071_vm12 = vmor %vm1069_vm11, %vm1070_vm4  ;;  %v1090_v59 = vand.u32 2147483648, %v1063_v48  ;;  %v1088_v1 = vand.u32 2147483647, %v1063_v48  ;;  %vm1084_vm7 = vweird.f32 %v1063_v48 }
 0xc7e   :  { %v1066_v49 = vsub.f32 1.0, %v1065_v46 }
 0xc7f   :  { %v1091_v38 = vor.u32 1.1754944e-38, %v1090_v59  ;;  %vm1089_vm9 = vcmp.eq.f32.partialorder %v1088_v1, 8.507059e+37 }
 0xc80   :  { %v1067_v50 = vmul.f32 %v2137_v15, %v1066_v49 }
 0xc82   :  { %v1068_v52 = vadd.f32 %v2137_v15, %v1067_v50 }
 0xc83   :  { %v2139_v53 = vpop.eup %2138 }
 0xc84   :  { %v1072_v55 = vsel %vm1071_vm12, %v2137_v15, %v1068_v52  ;;  %v1080_v21 = vmul.f32 %v2139_v53, %v1063_v48  ;;  %v2052_v56 = vpop.permute.xlu2 %2051  ;;  %v2755_v0 = vpop.xlane.xlu1 %1191  ;;  %vm1085_vm2 = vweird.f32 %v2139_v53 }
 0xc85   :  { %v1077_v57 = vsel %vm1074_vm14, %v1076_v54, %v1072_v55  ;;  %v2053_v28 = vunpack.i.l.bf16 %v2052_v56  ;;  %v2054_v63 = vunpack.i.h.bf16 %v2052_v56  ;;  %vm1086_vm8 = vmor %vm1084_vm7, %vm1085_vm2  ;;  %2140 = vrcp.f32 %v2755_v0 }
 0xc86   :  { %v1081_v58 = vsub.f32 1.0, %v1080_v21  ;;  %v1078_v60 = vmul.f32 %v2716_v3, %v1077_v57  ;;  %v1207_v41 = vand.u32 2147483648, %v2755_v0  ;;  %vm1201_vm2 = vweird.f32 %v2755_v0 }
 0xc87   :  { %1392 = vmatpush.msrb.mxu0 %v2053_v28  ;;  %v1205_v47 = vand.u32 2147483647, %v2755_v0 }
 0xc88   :  { %v1082_v62 = vmul.f32 %v2139_v53, %v1081_v58  ;;  %1945 = vmatmul.msk.f32.vlgmr.msra.gmra.mxu0 %vm210_vm6, %v1078_v60  ;;  %v1208_v44 = vor.u32 1.1754944e-38, %v1207_v41  ;;  %v1967_v41 = vld [vmem:[%s2969_s6 + $0x30] sm:$0xff] }
 0xc89   :  { %1393 = vmatpush.msrb.mxu0 %v2054_v63 }
 0xc8a   :  { %v1083_v4 = vadd.f32 %v2139_v53, %v1082_v62 }
 0xc8b   :  { %v2141_v11 = vpop.eup %2140 }
 0xc8c   :  { %v2758_v5 = vpop.xlane.xlu0 %1194  ;;  %v1087_v6 = vsel %vm1086_vm8, %v2139_v53, %v1083_v4  ;;  %v1197_v14 = vmul.f32 %v2141_v11, %v2755_v0  ;;  %vm1202_vm14 = vweird.f32 %v2141_v11  ;;  %vm1206_vm8 = vcmp.eq.f32.partialorder %v1205_v47, 8.507059e+37  ;;  %v1966_v47 = vld [vmem:[%s2969_s6 + $0x28] sm:$0xff] }
 0xc8d   :  { %v1092_v3 = vsel %vm1089_vm9, %v1091_v38, %v1087_v6  ;;  %vm1203_vm7 = vmor %vm1201_vm2, %vm1202_vm14  ;;  %v1222_v58 = vand.u32 2147483648, %v2758_v5  ;;  %v1220_v0 = vand.u32 2147483647, %v2758_v5 }
 0xc8e   :  { %v1093_v9 = vmul.f32 %v2720_v8, %v1092_v3  ;;  %v1198_v17 = vsub.f32 1.0, %v1197_v14 }
 0xc90   :  { %v1332_v10 = vpop.xlane.xlu1 %1331  ;;  %1946 = vmatmul.msk.f32.gmra.mxu0 %vm210_vm6, %v1093_v9  ;;  %v1199_v29 = vmul.f32 %v2141_v11, %v1198_v17 }
 0xc91   :  { %2142 = vrcp.f32 %v1332_v10  ;;  %v1347_v20 = vand.u32 2147483648, %v1332_v10  ;;  %v1345_v8 = vand.u32 2147483647, %v1332_v10  ;;  %vm1341_vm4 = vweird.f32 %v1332_v10 }
 0xc92   :  { %2144 = vrcp.f32 %v2758_v5  ;;  %v1200_v36 = vadd.f32 %v2141_v11, %v1199_v29 }
 0xc93   :  { %v1348_v31 = vor.u32 1.1754944e-38, %v1347_v20  ;;  %vm1346_vm12 = vcmp.eq.f32.partialorder %v1345_v8, 8.507059e+37 }
 0xc94   :  { %v2763_v12 = vpop.xlane.xlu0 %1471  ;;  %v1204_v46 = vsel %vm1203_vm7, %v2141_v11, %v1200_v36  ;;  %vm1221_vm7 = vcmp.eq.f32.partialorder %v1220_v0, 8.507059e+37 }
 0xc95   :  { %2146 = vrcp.f32 %v2763_v12  ;;  %v1209_v54 = vsel %vm1206_vm8, %v1208_v44, %v1204_v46  ;;  %v1487_v11 = vand.u32 2147483648, %v2763_v12  ;;  %v1485_v14 = vand.u32 2147483647, %v2763_v12 }
 0xc96   :  { %v1210_v62 = vmul.f32 %v2724_v13, %v1209_v54  ;;  %v1223_v13 = vor.u32 1.1754944e-38, %v1222_v58 }
 0xc97   :  { %v2143_v16 = vpop.eup %2142  ;;  %v1488_v17 = vor.u32 1.1754944e-38, %v1487_v11 }
 0xc98   :  { %v1337_v43 = vmul.f32 %v2143_v16, %v1332_v10  ;;  %v2767_v19 = vpop.eup %2144  ;;  %vm1342_vm10 = vweird.f32 %v2143_v16 }
 0xc99   :  { %v1212_v27 = vmul.f32 %v2767_v19, %v2758_v5  ;;  %vm1343_vm11 = vmor %vm1341_vm4, %vm1342_vm10  ;;  %vm1217_vm10 = vweird.f32 %v2767_v19 }
 0xc9a   :  { %v1338_v18 = vsub.f32 1.0, %v1337_v43 }
 0xc9b   :  { %v2772_v35 = vpop.eup %2146  ;;  %v1213_v37 = vsub.f32 1.0, %v1212_v27 }
 0xc9c   :  { %v1339_v25 = vmul.f32 %v2143_v16, %v1338_v18  ;;  %v1335_v26 = vpop.xlane.xlu0 %1334  ;;  %vm1482_vm8 = vweird.f32 %v2772_v35 }
 0xc9d   :  { %2148 = vrcp.f32 %v1335_v26  ;;  %v1214_v48 = vmul.f32 %v2767_v19, %v1213_v37  ;;  %v1362_v50 = vand.u32 2147483648, %v1335_v26  ;;  %v1360_v53 = vand.u32 2147483647, %v1335_v26 }
 0xc9e   :  { %v1340_v30 = vadd.f32 %v2143_v16, %v1339_v25  ;;  %vm1356_vm4 = vweird.f32 %v1335_v26 }
 0xc9f   :  { %v1215_v57 = vadd.f32 %v2767_v19, %v1214_v48  ;;  %v1363_v59 = vor.u32 1.1754944e-38, %v1362_v50  ;;  %vm1361_vm14 = vcmp.eq.f32.partialorder %v1360_v53, 8.507059e+37 }
 0xca0   :  { %v1344_v32 = vsel %vm1343_vm11, %v2143_v16, %v1340_v30  ;;  %vm1216_vm11 = vweird.f32 %v2758_v5 }
 0xca1   :  { %v1349_v34 = vsel %vm1346_vm12, %v1348_v31, %v1344_v32  ;;  %vm1218_vm2 = vmor %vm1216_vm11, %vm1217_vm10 }
 0xca2   :  { %v1350_v23 = vmul.f32 %v2732_v7, %v1349_v34  ;;  %v1477_v7 = vmul.f32 %v2772_v35, %v2763_v12  ;;  %v1219_v3 = vsel %vm1218_vm2, %v2767_v19, %v1215_v57 }
 0xca3   :  { %v2149_v40 = vpop.eup %2148  ;;  %v1224_v5 = vsel %vm1221_vm7, %v1223_v13, %v1219_v3  ;;  %v1976_v3 = vld [vmem:[%s2973_s10 + $0x30] sm:$0xff]  ;;  %v1975_v13 = vld [vmem:[%s2973_s10 + $0x28] sm:$0xff] }
 0xca4   :  { %v1352_v45 = vmul.f32 %v2149_v40, %v1335_v26  ;;  %v2778_v15 = vpop.xlane.xlu0 %1474  ;;  %1957 = vmatmul.msk.f32.vlgmr.msrb.gmra.mxu0 %vm210_vm6, %v1350_v23  ;;  %vm1357_vm9 = vweird.f32 %v2149_v40  ;;  %v1478_v21 = vsub.f32 1.0, %v1477_v7 }
 0xca5   :  { %2150 = vrcp.f32 %v2778_v15  ;;  %vm1358_vm12 = vmor %vm1356_vm4, %vm1357_vm9  ;;  %vm1481_vm9 = vweird.f32 %v2763_v12  ;;  %vm1486_vm4 = vcmp.eq.f32.partialorder %v1485_v14, 8.507059e+37  ;;  %v1502_v26 = vand.u32 2147483648, %v2778_v15 }
 0xca6   :  { %v1353_v49 = vsub.f32 1.0, %v1352_v45  ;;  %v1479_v4 = vmul.f32 %v2772_v35, %v1478_v21  ;;  %vm1483_vm10 = vmor %vm1481_vm9, %vm1482_vm8  ;;  %v1500_v12 = vand.u32 2147483647, %v2778_v15  ;;  %v1965_v45 = vld [vmem:[%s2969_s6 + $0x20] sm:$0xff] }
 0xca7   :  { %v1503_v27 = vor.u32 1.1754944e-38, %v1502_v26  ;;  %v1985_v26 = vld [vmem:[%s2974_s12 + $0x60] sm:$0xff] }
 0xca8   :  { %v1354_v51 = vmul.f32 %v2149_v40, %v1353_v49  ;;  %v2047_v52 = vpop.permute.xlu1 %2046  ;;  %v1480_v9 = vadd.f32 %v2772_v35, %v1479_v4  ;;  %vm1501_vm2 = vcmp.eq.f32.partialorder %v1500_v12, 8.507059e+37  ;;  %v2070_v12 = vld [vmem:[%s2970_s8 + $0x1] ss:$0 sm:$0xff] }
 0xca9   :  { %v2048_v55 = vunpack.i.l.bf16 %v2047_v52  ;;  %v2049_v60 = vunpack.i.h.bf16 %v2047_v52  ;;  %v2069_v52 = vld [vmem:[%s2968_s7 + $0x1] ss:$0 sm:$0xff] }
 0xcaa   :  { %v1355_v56 = vadd.f32 %v2149_v40, %v1354_v51  ;;  %v1484_v16 = vsel %vm1483_vm10, %v2772_v35, %v1480_v9 }
 0xcab   :  { %v2151_v28 = vpop.eup %2150  ;;  %1252 = vmatpush.msra.mxu1 %v2048_v55  ;;  %v1489_v20 = vsel %vm1486_vm4, %v1488_v17, %v1484_v16  ;;  %v1987_v17 = vld [vmem:[%s2974_s12 + $0x70] sm:$0xff] }
 0xcac   :  { %v1359_v63 = vsel %vm1358_vm12, %v2149_v40, %v1355_v56  ;;  %v1492_v38 = vmul.f32 %v2151_v28, %v2778_v15  ;;  %vm1497_vm11 = vweird.f32 %v2151_v28  ;;  %vm1496_vm12 = vweird.f32 %v2778_v15  ;;  %v1968_v40 = vld [vmem:[%s2969_s6 + $0x38] sm:$0xff] }
 0xcad   :  { %1253 = vmatpush.msra.mxu1 %v2049_v60  ;;  %v1364_v1 = vsel %vm1361_vm14, %v1363_v59, %v1359_v63  ;;  %vm1498_vm14 = vmor %vm1496_vm12, %vm1497_vm11  ;;  %1581 = vmatpush.msrb.mxu2 %v1968_v40 }
 0xcae   :  { %1951 = vmatmul.msk.f32.vlgmr.msra.gmra.mxu1 %vm210_vm6, %v1210_v62  ;;  %v1365_v6 = vmul.f32 %v2742_v39, %v1364_v1  ;;  %v1493_v10 = vsub.f32 1.0, %v1492_v38  ;;  %v1225_v39 = vmul.f32 %v2728_v24, %v1224_v5  ;;  %v1490_v24 = vmul.f32 %v2736_v33, %v1489_v20  ;;  %v1974_v5 = vld [vmem:[%s2973_s10 + $0x20] sm:$0xff] }
 0xcaf   :  { %1582 = vmatpush.msrb.mxu2 %v1967_v41 }
 0xcb0   :  { %1958 = vmatmul.msk.f32.gmra.mxu0 %vm210_vm6, %v1365_v6  ;;  %v1494_v43 = vmul.f32 %v2151_v28, %v1493_v10 }
 0xcb1   :  { %1583 = vmatpush.msrb.mxu2 %v1966_v47 }
 0xcb2   :  { %v1495_v8 = vadd.f32 %v2151_v28, %v1494_v43  ;;  %v1988_v43 = vld [vmem:[%s2974_s12 + $0x78] sm:$0xff] }
 0xcb3   :  { %1584 = vmatpush.msrb.mxu2 %v1965_v45  ;;  %1721 = vmatpush.msra.mxu3 %v1988_v43 }
 0xcb4   :  { %v1499_v29 = vsel %vm1498_vm14, %v2151_v28, %v1495_v8 }
 0xcb5   :  { %v1504_v30 = vsel %vm1501_vm2, %v1503_v27, %v1499_v29  ;;  %1722 = vmatpush.msra.mxu3 %v1987_v17  ;;  %v1984_v27 = vld [vmem:[%s2974_s12 + $0x58] sm:$0xff] }
 0xcb6   :  { %1952 = vmatmul.msk.f32.gmra.mxu1 %vm210_vm6, %v1225_v39  ;;  %v1505_v31 = vmul.f32 %v2746_v42, %v1504_v30 }
 0xcb7   :  { %v2057_v18 = vpop.permute.xlu0 %2056 }
 0xcb8   :  { %v2058_v19 = vunpack.i.l.bf16 %v2057_v18  ;;  %v2059_v25 = vunpack.i.h.bf16 %v2057_v18 }
 0xcba   :  { %1532 = vmatpush.msrb.mxu1 %v2058_v19  ;;  %v1986_v19 = vld [vmem:[%s2974_s12 + $0x68] sm:$0xff] }
 0xcbb   :  { %1723 = vmatpush.msra.mxu3 %v1986_v19  ;;  %v1838_v19 = vld [vmem:[%s2980_s18 + $0x18] sm:$0xff] }
 0xcbc   :  { %1533 = vmatpush.msrb.mxu1 %v2059_v25  ;;  %1861 = vmatpush.msra.mxu2 %v1838_v19 }
 0xcbd   :  { %1724 = vmatpush.msra.mxu3 %v1985_v26 }
 0xcbe   :  { %1963 = vmatmul.msk.f32.vlgmr.msrb.gmra.mxu1 %vm210_vm6, %v1490_v24 }
 0xcbf   :  { %1725 = vmatpush.msra.mxu3 %v1984_v27 }
 0xcc6   :  { %1964 = vmatmul.msk.f32.gmra.mxu1 %vm210_vm6, %v1505_v31 }
 0xd05   :  { %v1123_v32 = vpop.f32.mrf.mxu0 }
 0xd06   :  { %1129 = vst.msk [vmem:[#allocation3] sm:$0xff] %vm174_vm5, %v1123_v32  ;;  %v2071_v32 = vld [vmem:[%s2971_s9 + $0x1] ss:$0 sm:$0xff] }
 0xd0d   :  { %v1126_v34 = vpop.f32.mrf.mxu0 }
 0xd0e   :  { %1130 = vst.msk [vmem:[#allocation3 + $0x8] sm:$0xff] %vm174_vm5, %v1126_v34 }
 0xd21   :  { %v1395_v33 = vpop.f32.mrf.mxu0 }
 0xd22   :  { %1403 = vrot.lane.b32.xlu1 %v1395_v33, %s3020_s24 }
 0xd2b   :  { %v1255_v35 = vpop.f32.mrf.mxu1 }
 0xd2c   :  { %1263 = vrot.lane.b32.xlu2 %v1255_v35, %s3021_s4 }
 0xd2d   :  { %v1398_v36 = vpop.f32.mrf.mxu0 }
 0xd2e   :  { %1405 = vrot.lane.b32.xlu0 %v1398_v36, %s3020_s24 }
 0xd33   :  { %v1258_v37 = vpop.f32.mrf.mxu1 }
 0xd34   :  { %1265 = vrot.lane.b32.xlu1 %v1258_v37, %s3021_s4 }
 0xd3b   :  { %v1535_v42 = vpop.f32.mrf.mxu1 }
 0xd3c   :  { %1543 = vrot.lane.b32.xlu2 %v1535_v42, %s2185_s25 }
 0xd43   :  { %v1538_v23 = vpop.f32.mrf.mxu1 }
 0xd44   :  { %1545 = vrot.lane.b32.xlu2 %v1538_v23, %s2185_s25 }
 0xd86   :  { %v1264_v15 = vpop.permute.xlu2 %1263 }
 0xd87   :  { %1269 = vst.msk [vmem:[#allocation3] sm:$0xff] %vm434_vm15, %v1264_v15 }
 0xd94   :  { %v1404_v46 = vpop.permute.xlu1 %1403 }
 0xd95   :  { %1409 = vst.msk [vmem:[#allocation3] sm:$0xff] %vm575_vm0, %v1404_v46  ;;  %v1983_v46 = vld [vmem:[%s2974_s12 + $0x50] sm:$0xff] }
 0xd96   :  { %v1544_v48 = vpop.permute.xlu2 %1543  ;;  %1726 = vmatpush.msra.mxu3 %v1983_v46  ;;  %v1835_v46 = vld [vmem:[%s2980_s18] sm:$0xff] }
 0xd97   :  { %1549 = vst.msk [vmem:[#allocation3] sm:$0xff] %vm716_vm1, %v1544_v48  ;;  %v1982_v48 = vld [vmem:[%s2974_s12 + $0x48] sm:$0xff] }
 0xd98   :  { %1727 = vmatpush.msra.mxu3 %v1982_v48  ;;  %v2076_v48 = vld [vmem:[%s2978_s17] ss:$0 sm:$0xff] }
 0xd9e   :  { %v1551_v7 = vld [vmem:[#allocation3] sm:$0xff]  ;;  %v1546_v50 = vpop.permute.xlu2 %1545 }
 0xd9f   :  { %1970 = vmatmul.msk.f32.vlgmr.msrb.gmra.mxu2 %vm133_vm3, %v1551_v7  ;;  %v1981_v7 = vld [vmem:[%s2974_s12 + $0x40] sm:$0xff] }
 0xda0   :  { %v1406_v44 = vpop.permute.xlu0 %1405  ;;  %1728 = vmatpush.msra.mxu3 %v1981_v7 }
 0xda6   :  { %v1266_v49 = vpop.permute.xlu1 %1265 }
 0xda7   :  { %1270 = vst.msk [vmem:[#allocation3 + $0x8] sm:$0xff] %vm434_vm15, %v1266_v49  ;;  %v2072_v49 = vld [vmem:[%s2972_s11 + $0x1] ss:$0 sm:$0xff] }
 0xda8   :  { %1410 = vst.msk [vmem:[#allocation3 + $0x8] sm:$0xff] %vm575_vm0, %v1406_v44 }
 0xda9   :  { %1550 = vst.msk [vmem:[#allocation3 + $0x8] sm:$0xff] %vm716_vm1, %v1546_v50 }
 0xdb0   :  { %v1552_v51 = vld [vmem:[#allocation3 + $0x8] sm:$0xff] }
 0xdb1   :  { %1971 = vmatmul.msk.f32.gmra.mxu2 %vm133_vm3, %v1552_v51 }
 0xe22   :  { %v1586_v53 = vpop.f32.mrf.mxu2 }
 0xe23   :  { %v1587_v54 = vadd.f32 %v2069_v52, %v1586_v53 }
 0xe25   :  { %v1592_v55 = vadd.f32 %v1587_v54, %v2633_v61 }
 0xe27   :  { %v1598_v21 = vsel %vm133_vm3, %v1592_v55, 0.0 }
 0xe28   :  { %1599 = vadd.xlane.f32.xlu1 %v1598_v21 }
 0xe34   :  { %v1589_v56 = vpop.f32.mrf.mxu2 }
 0xe35   :  { %v1590_v57 = vadd.f32 %v2069_v52, %v1589_v56 }
 0xe37   :  { %v1593_v28 = vadd.f32 %v1590_v57, %v2637_v2  ;;  %v1977_v2 = vld [vmem:[%s2973_s10 + $0x38] sm:$0xff] }
 0xe38   :  { %1680 = vmatpush.msra.mxu0 %v1977_v2 }
 0xe39   :  { %v1601_v58 = vsel %vm133_vm3, %v1593_v28, 0.0 }
 0xe3a   :  { %1602 = vadd.xlane.f32.xlu0 %v1601_v58  ;;  %1681 = vmatpush.msra.mxu0 %v1976_v3 }
 0xe3c   :  { %1682 = vmatpush.msra.mxu0 %v1975_v13 }
 0xe3e   :  { %1683 = vmatpush.msra.mxu0 %v1974_v5  ;;  %v1799_v5 = vld [vmem:[%s2979_s16 + $0x18] sm:$0xff] }
 0xe3f   :  { %1822 = vmatpush.msra.mxu1 %v1799_v5 }
 0xe9b   :  { %v1600_v59 = vpop.xlane.xlu1 %1599 }
 0xe9c   :  { %v1604_v60 = vmul.f32 %v1600_v59, %v2547_v22 }
 0xe9e   :  { %v1606_v62 = vsub.f32 %v1592_v55, %v1604_v60  ;;  %v2073_v55 = vld [vmem:[%s2975_s13 + $0x1] ss:$0 sm:$0xff] }
 0xea0   :  { %v1608_v63 = vmul.f32 %v1606_v62, %v1606_v62 }
 0xea2   :  { %v1610_v0 = vsel %vm133_vm3, %v1608_v63, 0.0 }
 0xea3   :  { %1611 = vadd.xlane.f32.xlu2 %v1610_v0 }
 0xead   :  { %v1603_v1 = vpop.xlane.xlu0 %1602 }
 0xeae   :  { %v1605_v61 = vmul.f32 %v1603_v1, %v2547_v22 }
 0xeb0   :  { %v1607_v4 = vsub.f32 %v1593_v28, %v1605_v61 }
 0xeb2   :  { %v1609_v38 = vmul.f32 %v1607_v4, %v1607_v4 }
 0xeb4   :  { %v1613_v6 = vsel %vm133_vm3, %v1609_v38, 0.0 }
 0xeb5   :  { %1614 = vadd.xlane.f32.xlu1 %v1613_v6 }
 0xf16   :  { %v1612_v9 = vpop.xlane.xlu2 %1611 }
 0xf17   :  { %v1616_v10 = vmul.f32 %v1612_v9, %v2547_v22  ;;  %v1798_v9 = vld [vmem:[%s2979_s16 + $0x10] sm:$0xff] }
 0xf18   :  { %1823 = vmatpush.msra.mxu1 %v1798_v9 }
 0xf19   :  { %v1618_v11 = vadd.f32 1e-05, %v1616_v10  ;;  %v1797_v10 = vld [vmem:[%s2979_s16 + $0x8] sm:$0xff] }
 0xf1a   :  { %1824 = vmatpush.msra.mxu1 %v1797_v10 }
 0xf1b   :  { %2152 = vrsqrt.f32 %v1618_v11  ;;  %vm1626_vm6 = vweird.f32 %v1618_v11 }
 0xf21   :  { %v2153_v14 = vpop.eup %2152 }
 0xf22   :  { %v1621_v39 = vmul.f32 %v2153_v14, %v1618_v11  ;;  %vm1627_vm5 = vweird.f32 %v2153_v14  ;;  %v1796_v11 = vld [vmem:[%s2979_s16] sm:$0xff] }
 0xf23   :  { %vm1628_vm15 = vmor %vm1626_vm6, %vm1627_vm5  ;;  %1825 = vmatpush.msra.mxu1 %v1796_v11 }
 0xf24   :  { %v1622_v16 = vmul.f32 %v2153_v14, %v1621_v39 }
 0xf26   :  { %v1623_v18 = vmul.f32 0.5, %v1622_v16 }
 0xf28   :  { %v1624_v20 = vsub.f32 1.5, %v1623_v18  ;;  %v1615_v25 = vpop.xlane.xlu1 %1614 }
 0xf29   :  { %v1617_v8 = vmul.f32 %v1615_v25, %v2547_v22 }
 0xf2a   :  { %v1625_v24 = vmul.f32 %v2153_v14, %v1624_v20 }
 0xf2b   :  { %v1619_v29 = vadd.f32 1e-05, %v1617_v8 }
 0xf2c   :  { %v1629_v30 = vsel %vm1628_vm15, %v2153_v14, %v1625_v24 }
 0xf2d   :  { %v1640_v31 = vmul.f32 %v1629_v30, %v1606_v62  ;;  %2154 = vrsqrt.f32 %v1619_v29  ;;  %vm1636_vm1 = vweird.f32 %v1619_v29 }
 0xf2f   :  { %v1645_v34 = vmul.f32 %v2070_v12, %v1640_v31  ;;  %v2075_v31 = vld [vmem:[%s2977_s15 + $0x1] ss:$0 sm:$0xff] }
 0xf31   :  { %v1650_v33 = vadd.f32 %v2071_v32, %v1645_v34 }
 0xf33   :  { %v2155_v35 = vpop.eup %2154  ;;  %1979 = vmatmul.msk.f32.vlgmr.msra.gmra.mxu0 %vm133_vm3, %v1650_v33 }
 0xf34   :  { %v1631_v36 = vmul.f32 %v2155_v35, %v1619_v29  ;;  %vm1637_vm0 = vweird.f32 %v2155_v35 }
 0xf35   :  { %vm1638_vm7 = vmor %vm1636_vm1, %vm1637_vm0 }
 0xf36   :  { %v1632_v37 = vmul.f32 %v2155_v35, %v1631_v36 }
 0xf38   :  { %v1633_v42 = vmul.f32 0.5, %v1632_v37 }
 0xf3a   :  { %v1634_v23 = vsub.f32 1.5, %v1633_v42 }
 0xf3c   :  { %v1635_v40 = vmul.f32 %v2155_v35, %v1634_v23 }
 0xf3e   :  { %v1639_v41 = vsel %vm1638_vm7, %v2155_v35, %v1635_v40 }
 0xf3f   :  { %v1641_v47 = vmul.f32 %v1639_v41, %v1607_v4 }
 0xf41   :  { %v1646_v45 = vmul.f32 %v2070_v12, %v1641_v47  ;;  %v2074_v12 = vld [vmem:[%s2976_s14 + $0x1] ss:$0 sm:$0xff] }
 0xf43   :  { %v1651_v15 = vadd.f32 %v2071_v32, %v1646_v45  ;;  %v1837_v45 = vld [vmem:[%s2980_s18 + $0x10] sm:$0xff] }
 0xf44   :  { %1862 = vmatpush.msra.mxu2 %v1837_v45 }
 0xf45   :  { %1980 = vmatmul.msk.f32.gmra.mxu0 %vm133_vm3, %v1651_v15 }
 0xfb0   :  { %v1685_v44 = vpop.f32.mrf.mxu0 }
 0xfb1   :  { %v1686_v50 = vadd.f32 %v2072_v49, %v1685_v44 }
 0xfb3   :  { %v1691_v51 = vmax.f32 %v1686_v50, 0.0 }
 0xfb5   :  { %1990 = vmatmul.msk.f32.vlgmr.msra.gmra.mxu3 %vm874_vm13, %v1691_v51 }
 0xfc2   :  { %v1688_v52 = vpop.f32.mrf.mxu0 }
 0xfc3   :  { %v1689_v53 = vadd.f32 %v2072_v49, %v1688_v52 }
 0xfc5   :  { %v1692_v54 = vmax.f32 %v1689_v53, 0.0  ;;  %v2077_v53 = vld [vmem:[%s2981_s19] ss:$0 sm:$0xff] }
 0xfc7   :  { %1991 = vmatmul.msk.f32.gmra.mxu3 %vm874_vm13, %v1692_v54 }
0x1038   :  { %v1730_v21 = vpop.f32.mrf.mxu3 }
0x1039   :  { %v1731_v56 = vadd.f32 %v2073_v55, %v1730_v21 }
0x103b   :  { %v1736_v57 = vadd.f32 %v1731_v56, %v1650_v33 }
0x103d   :  { %v1742_v28 = vsel %vm133_vm3, %v1736_v57, 0.0 }
0x103e   :  { %1743 = vadd.xlane.f32.xlu0 %v1742_v28 }
0x104a   :  { %v1733_v58 = vpop.f32.mrf.mxu3 }
0x104b   :  { %v1734_v59 = vadd.f32 %v2073_v55, %v1733_v58 }
0x104d   :  { %v1737_v60 = vadd.f32 %v1734_v59, %v1651_v15  ;;  %v1836_v15 = vld [vmem:[%s2980_s18 + $0x8] sm:$0xff] }
0x104e   :  { %1863 = vmatpush.msra.mxu2 %v1836_v15 }
0x104f   :  { %v1745_v62 = vsel %vm133_vm3, %v1737_v60, 0.0 }
0x1050   :  { %1746 = vadd.xlane.f32.xlu2 %v1745_v62  ;;  %1864 = vmatpush.msra.mxu2 %v1835_v46 }
0x10b1   :  { %v1744_v63 = vpop.xlane.xlu0 %1743 }
0x10b2   :  { %v1748_v0 = vmul.f32 %v1744_v63, %v2547_v22 }
0x10b4   :  { %v1750_v1 = vsub.f32 %v1736_v57, %v1748_v0 }
0x10b6   :  { %v1752_v61 = vmul.f32 %v1750_v1, %v1750_v1 }
0x10b8   :  { %v1754_v4 = vsel %vm133_vm3, %v1752_v61, 0.0 }
0x10b9   :  { %1755 = vadd.xlane.f32.xlu1 %v1754_v4 }
0x10c3   :  { %v1747_v38 = vpop.xlane.xlu2 %1746 }
0x10c4   :  { %v1749_v6 = vmul.f32 %v1747_v38, %v2547_v22 }
0x10c6   :  { %v1751_v2 = vsub.f32 %v1737_v60, %v1749_v6 }
0x10c8   :  { %v1753_v3 = vmul.f32 %v1751_v2, %v1751_v2 }
0x10ca   :  { %v1757_v13 = vsel %vm133_vm3, %v1753_v3, 0.0 }
0x10cb   :  { %1758 = vadd.xlane.f32.xlu0 %v1757_v13 }
0x112c   :  { %v1756_v14 = vpop.xlane.xlu1 %1755 }
0x112d   :  { %v1760_v39 = vmul.f32 %v1756_v14, %v2547_v22 }
0x112f   :  { %v1762_v16 = vadd.f32 1e-05, %v1760_v39 }
0x1131   :  { %2156 = vrsqrt.f32 %v1762_v16  ;;  %vm1770_vm8 = vweird.f32 %v1762_v16 }
0x1137   :  { %v2157_v43 = vpop.eup %2156 }
0x1138   :  { %v1765_v17 = vmul.f32 %v2157_v43, %v1762_v16  ;;  %vm1771_vm13 = vweird.f32 %v2157_v43 }
0x1139   :  { %vm1772_vm9 = vmor %vm1770_vm8, %vm1771_vm13 }
0x113a   :  { %v1766_v18 = vmul.f32 %v2157_v43, %v1765_v17 }
0x113c   :  { %v1767_v20 = vmul.f32 0.5, %v1766_v18 }
0x113e   :  { %v1768_v25 = vsub.f32 1.5, %v1767_v20  ;;  %v1759_v8 = vpop.xlane.xlu0 %1758 }
0x113f   :  { %v1761_v26 = vmul.f32 %v1759_v8, %v2547_v22 }
0x1140   :  { %v1769_v24 = vmul.f32 %v2157_v43, %v1768_v25 }
0x1141   :  { %v1763_v29 = vadd.f32 1e-05, %v1761_v26 }
0x1142   :  { %v1773_v27 = vsel %vm1772_vm9, %v2157_v43, %v1769_v24 }
0x1143   :  { %v1784_v30 = vmul.f32 %v1773_v27, %v1750_v1  ;;  %2158 = vrsqrt.f32 %v1763_v29  ;;  %vm1780_vm4 = vweird.f32 %v1763_v29 }
0x1145   :  { %v1789_v32 = vmul.f32 %v2074_v12, %v1784_v30 }
0x1147   :  { %v1794_v34 = vadd.f32 %v2075_v31, %v1789_v32 }
0x1149   :  { %v2159_v33 = vpop.eup %2158  ;;  %1994 = vmatmul.msk.f32.vlgmr.msra.gmra.mxu1 %vm133_vm3, %v1794_v34 }
0x114a   :  { %v1775_v22 = vmul.f32 %v2159_v33, %v1763_v29  ;;  %vm1781_vm10 = vweird.f32 %v2159_v33 }
0x114b   :  { %vm1782_vm11 = vmor %vm1780_vm4, %vm1781_vm10 }
0x114c   :  { %v1776_v35 = vmul.f32 %v2159_v33, %v1775_v22 }
0x114e   :  { %v1777_v36 = vmul.f32 0.5, %v1776_v35 }
0x1150   :  { %v1778_v37 = vsub.f32 1.5, %v1777_v36 }
0x1152   :  { %v1779_v42 = vmul.f32 %v2159_v33, %v1778_v37 }
0x1154   :  { %v1783_v23 = vsel %vm1782_vm11, %v2159_v33, %v1779_v42 }
0x1155   :  { %v1785_v40 = vmul.f32 %v1783_v23, %v1751_v2 }
0x1157   :  { %v1790_v41 = vmul.f32 %v2074_v12, %v1785_v40 }
0x1159   :  { %v1795_v47 = vadd.f32 %v2075_v31, %v1790_v41 }
0x115b   :  { %1995 = vmatmul.msk.f32.gmra.mxu1 %vm133_vm3, %v1795_v47 }
0x11c6   :  { %v1827_v7 = vpop.f32.mrf.mxu1 }
0x11c7   :  { %v1828_v49 = vadd.f32 %v2076_v48, %v1827_v7 }
0x11c9   :  { %v1833_v44 = vmax.f32 %v1828_v49, 0.0 }
0x11cb   :  { %1996 = vmatmul.msk.f32.vlgmr.msra.gmra.mxu2 %vm133_vm3, %v1833_v44 }
0x11d8   :  { %v1830_v50 = vpop.f32.mrf.mxu1 }
0x11d9   :  { %v1831_v51 = vadd.f32 %v2076_v48, %v1830_v50 }
0x11db   :  { %v1834_v52 = vmax.f32 %v1831_v51, 0.0 }
0x11dd   :  { %1997 = vmatmul.msk.f32.gmra.mxu2 %vm133_vm3, %v1834_v52 }
0x124e   :  { %v1866_v54 = vpop.f32.mrf.mxu2 }
0x124f   :  { %v1867_v55 = vadd.f32 %v2077_v53, %v1866_v54 }
0x1251   :  { %1872 = vmax.xlane.f32.xlu2 %v1867_v55 }
0x1260   :  { %v1869_v21 = vpop.f32.mrf.mxu2 }
0x1261   :  { %v1870_v56 = vadd.f32 %v2077_v53, %v1869_v21 }
0x1263   :  { %1874 = vmax.xlane.f32.xlu1 %v1870_v56 }
0x12c4   :  { %v1873_v57 = vpop.xlane.xlu2 %1872 }
0x12c5   :  { %v1876_v28 = vsub.f32 %v1867_v55, %v1873_v57 }
0x12c7   :  { %v1878_v58 = vmul.f32 1.442695, %v1876_v28 }
0x12c9   :  { %2160 = vpow2.f32 %v1878_v58 }
0x12cf   :  { %v2161_v59 = vpop.eup %2160 }
0x12d0   :  { %1882 = vadd.xlane.f32.xlu0 %v2161_v59 }
0x12d6   :  { %v1875_v60 = vpop.xlane.xlu1 %1874 }
0x12d7   :  { %v1877_v62 = vsub.f32 %v1870_v56, %v1875_v60 }
0x12d9   :  { %v1880_v63 = vmul.f32 1.442695, %v1877_v62 }
0x12db   :  { %2162 = vpow2.f32 %v1880_v63 }
0x12e1   :  { %v2163_v0 = vpop.eup %2162 }
0x12e2   :  { %1884 = vadd.xlane.f32.xlu2 %v2163_v0 }
0x1343   :  { %v1883_v1 = vpop.xlane.xlu0 %1882 }
0x1344   :  { %2164 = vlog2.f32 %v1883_v1 }
0x134a   :  { %v2165_v61 = vpop.eup %2164 }
0x134b   :  { %v1887_v4 = vmul.f32 0.6931472, %v2165_v61 }
0x134d   :  { %v1890_v38 = vsub.f32 %v1876_v28, %v1887_v4 }
0x134f   :  { %1892 = vst [vmem:[%s2982_s20] sm:$0xff] %v1890_v38 }
0x1355   :  { %v1885_v6 = vpop.xlane.xlu2 %1884 }
0x1356   :  { %2166 = vlog2.f32 %v1885_v6 }
0x135c   :  { %v2167_v2 = vpop.eup %2166 }
0x135d   :  { %v1889_v3 = vmul.f32 0.6931472, %v2167_v2 }
0x135f   :  { %v1891_v13 = vsub.f32 %v1877_v62, %v1889_v3 }
0x1361   :  { %1893 = vst [vmem:[%s2982_s20 + $0x8] sm:$0xff] %v1891_v13 }

</bundles_post_ra>
